<compile_context>
chip_gen: v7x
topology: tpu7x:2x2x1
jax: 0.10.0
libtpu: 0.0.40
codegen_flags: <defaults>
</compile_context>

<pallas_src>
import math

import jax
import jax.numpy as jnp
import numpy as np
from jax.experimental import pallas as pl
from jax.experimental.pallas import tpu as pltpu


# ----------------------------------------------------------------------------- kernel
def _make_kernel(T, width, scale, kernel_size, dilation, planes, inplanes, compute_dtype):
    nums = scale - 1
    pad = (kernel_size // 2) * dilation
    cdt = compute_dtype

    def kernel(x_ref, w1_ref, b1_ref, bn1s_ref, bn1b_ref,
               wc_ref, bc_ref, bnss_ref, bnsb_ref,
               w3_ref, b3_ref, bn3s_ref, bn3b_ref,
               sew1_ref, seb1_ref, sew2_ref, seb2_ref,
               o_ref, pad_ref, hsc_ref):
        x = x_ref[0]                                              # (T, inplanes), input dtype

        # conv1 (1x1) -> ReLU -> BN1 (folded); f32 accumulation + f32 elementwise
        h = jnp.dot(x.astype(cdt), w1_ref[...],
                    preferred_element_type=jnp.float32) + b1_ref[...]
        h = jnp.maximum(h, 0.0)
        h = h * bn1s_ref[...] + bn1b_ref[...]                     # (T, width*scale) f32

        # zero the halo rows of the persistent padded scratch (middle rows are overwritten
        # every branch iteration). Re-zeroed each grid step for megacore safety (see note).
        if pad > 0:
            zeros_halo = jnp.zeros((pad, width), cdt)
            pad_ref[pl.ds(0, pad), :] = zeros_halo
            pad_ref[pl.ds(pad + T, pad), :] = zeros_halo

        # Res2Net branches. Each branch output lands (in compute dtype) in the persistent
        # (T, ws) scratch at its column offset; conv3 is a single matmul afterwards.
        sp = None
        for i in range(nums):
            chunk = h[:, i * width:(i + 1) * width]               # (T, width) f32
            sp = chunk if i == 0 else sp + chunk                  # running f32 recursion
            pad_ref[pl.ds(pad, T), :] = sp.astype(cdt)
            # dilated "same" conv as K shifted (T,width)@(width,width) MXU dots
            # (no lane-axis concatenate / relayout); f32 accumulation.
            conv = jnp.dot(pad_ref[pl.ds(0, T), :], wc_ref[i * kernel_size],
                           preferred_element_type=jnp.float32) + bc_ref[i]
            for j in range(1, kernel_size):
                conv = conv + jnp.dot(pad_ref[pl.ds(j * dilation, T), :],
                                      wc_ref[i * kernel_size + j],
                                      preferred_element_type=jnp.float32)
            sp = jnp.maximum(conv, 0.0)                           # ReLU
            sp = sp * bnss_ref[i] + bnsb_ref[i]                   # BN_i (folded), f32
            hsc_ref[:, i * width:(i + 1) * width] = sp.astype(cdt)
        # last (untouched) split goes straight into the conv3 operand
        hsc_ref[:, nums * width:] = h[:, nums * width:].astype(cdt)

        # conv3 (single (T, ws) @ (ws, planes) matmul) -> bias -> ReLU -> BN3 (folded)
        out = jnp.dot(hsc_ref[...], w3_ref[...],
                      preferred_element_type=jnp.float32) + b3_ref[...]
        out = jnp.maximum(out, 0.0)
        out = out * bn3s_ref[...] + bn3b_ref[...]                 # (T, planes) f32

        # SEModule: mean over time -> 1x1 conv -> ReLU -> 1x1 conv -> sigmoid -> scale
        pooled = jnp.mean(out, axis=0, keepdims=True)             # (1, planes) f32
        s = jnp.dot(pooled.astype(cdt), sew1_ref[...],
                    preferred_element_type=jnp.float32) + seb1_ref[...]
        s = jnp.maximum(s, 0.0)
        s = jnp.dot(s.astype(cdt), sew2_ref[...],
                    preferred_element_type=jnp.float32) + seb2_ref[...]
        s = jax.nn.sigmoid(s)                                     # (1, planes) f32
        out = out * s

        out = out + x.astype(jnp.float32)                         # full-precision residual
        o_ref[0] = out.astype(o_ref.dtype)

    return kernel


# ----------------------------------------------------------------------------- wrapper
def bottle2neck_forward(x_ncl, params, *, kernel_size, dilation, scale,
                        compute_dtype=jnp.bfloat16, out_dtype=None):
    B, C, T = x_ncl.shape
    inplanes, ws = params["w1"].shape
    planes = params["w3"].shape[1]
    nums, K, width, _ = params["wc"].shape
    bottleneck = params["se_w1"].shape[1]
    assert K == kernel_size and nums == scale - 1 and ws == width * scale
    assert inplanes == planes, (
        "residual add requires inplanes == planes (no downsample path in this module)")

    cdt = compute_dtype
    if out_dtype is None:
        out_dtype = compute_dtype
    f32 = jnp.float32
    pad = (kernel_size // 2) * dilation

    # Residual input stays in its original dtype (cast to cdt inside the kernel only for
    # the conv1 matmul) so the skip connection adds un-rounded x.
    x = jnp.transpose(x_ncl, (0, 2, 1))                           # (B, T, C) channels-last

    # MXU weights in compute dtype; element-wise scale/bias stay f32.
    flat = [
        params["w1"].astype(cdt),                                 # (inplanes, ws)
        params["b1"].astype(f32),                                 # (1, ws)
        params["bn1_s"].astype(f32), params["bn1_b"].astype(f32),
        params["wc"].reshape(nums * K, width, width).astype(cdt),  # per (branch, tap) weight
        params["bc"].astype(f32),                                 # (nums, width)
        params["bns_s"].astype(f32), params["bns_b"].astype(f32),
        params["w3"].astype(cdt),                                 # (ws, planes)
        params["b3"].astype(f32),                                 # (1, planes)
        params["bn3_s"].astype(f32), params["bn3_b"].astype(f32),
        params["se_w1"].astype(cdt), params["se_b1"].astype(f32),
        params["se_w2"].astype(cdt), params["se_b2"].astype(f32),
    ]

    def full_spec(a):
        nd = a.ndim
        idx = lambda b, _nd=nd: (0,) * _nd
        # Constant index across the B grid -> single-buffer to reclaim VMEM.
        try:
            return pl.BlockSpec(a.shape, idx, pipeline_mode=pl.Buffered(1))
        except TypeError:  # older JAX without pipeline_mode on BlockSpec
            return pl.BlockSpec(a.shape, idx)

    in_specs = [pl.BlockSpec((1, T, inplanes), lambda b: (b, 0, 0))]
    in_specs += [full_spec(a) for a in flat]
    out_spec = pl.BlockSpec((1, T, planes), lambda b: (b, 0, 0))

    kernel = _make_kernel(T, width, scale, kernel_size, dilation,
                          planes, inplanes, cdt)

    # VMEM limit: physical capacity with ~25% headroom (v7x has only 64 MiB per core).
    try:
        vmem_cap = int(pltpu.get_tpu_info().vmem_capacity_bytes)
    except Exception:
        vmem_cap = 128 * 1024 * 1024
    vmem_limit = max(32 * 1024 * 1024, (vmem_cap * 3) // 4)

    # Advisory cost estimate for XLA scheduling around the custom call.
    flops = 2 * B * T * (inplanes * ws + nums * kernel_size * width * width + ws * planes)
    flops += 2 * B * (planes * bottleneck + bottleneck * planes)
    bytes_accessed = int(x.size) * x.dtype.itemsize
    bytes_accessed += B * T * planes * jnp.dtype(out_dtype).itemsize
    bytes_accessed += sum(int(a.size) * a.dtype.itemsize for a in flat)
    cost = pl.CostEstimate(flops=int(flops),
                           transcendentals=int(B * planes),
                           bytes_accessed=int(bytes_accessed))

    out = pl.pallas_call(
        kernel,
        out_shape=jax.ShapeDtypeStruct((B, T, planes), out_dtype),
        grid_spec=pltpu.PrefetchScalarGridSpec(
            num_scalar_prefetch=0,
            grid=(B,),
            in_specs=in_specs,
            out_specs=out_spec,
            scratch_shapes=[
                pltpu.VMEM((T + 2 * pad, width), cdt),   # halo-padded branch input
                pltpu.VMEM((T, ws), cdt),                # assembled conv3 operand
            ],
        ),
        compiler_params=pltpu.CompilerParams(
            dimension_semantics=("parallel",),
            vmem_limit_bytes=int(vmem_limit),
        ),
        cost_estimate=cost,
    )(x, *flat)

    return jnp.transpose(out, (0, 2, 1))                          # back to NCL (B, C, T)


# ----------------------------------------------------------------------------- params
def init_params(key, inplanes, planes, kernel_size, dilation, scale, bottleneck=128):
    width = int(math.floor(planes / scale))
    ws = width * scale
    nums = scale - 1
    eps = 1e-5
    ks = iter(jax.random.split(key, 64))

    def rn(shape, s=0.1):
        return jax.random.normal(next(ks), shape, jnp.float32) * s

    def bn(n):
        gamma = 1.0 + rn((n,))
        beta = rn((n,))
        mean = rn((n,))
        var = 1.0 + jnp.abs(rn((n,)))
        sc = gamma / jnp.sqrt(var + eps)
        return sc.reshape(1, n), (beta - mean * sc).reshape(1, n)

    def bn_rows(rows, n):
        scs, bss = [], []
        for _ in range(rows):
            s_, b_ = bn(n)
            scs.append(s_)
            bss.append(b_)
        return jnp.concatenate(scs, 0), jnp.concatenate(bss, 0)

    p = {}
    p["w1"] = rn((inplanes, ws))                       # torch (ws, inplanes, 1) transposed
    p["b1"] = rn((1, ws))
    p["bn1_s"], p["bn1_b"] = bn(ws)
    p["wc"] = rn((nums, kernel_size, width, width))    # torch (out, in, K) -> (K, in, out) per branch
    p["bc"] = rn((nums, width))
    p["bns_s"], p["bns_b"] = bn_rows(nums, width)
    p["w3"] = rn((ws, planes))
    p["b3"] = rn((1, planes))
    p["bn3_s"], p["bn3_b"] = bn(planes)
    p["se_w1"] = rn((planes, bottleneck))
    p["se_b1"] = rn((1, bottleneck))
    p["se_w2"] = rn((bottleneck, planes))
    p["se_b2"] = rn((1, planes))
    return p


# ----------------------------------------------------------------------------- reference
def ref_forward(x_ncl, p, *, kernel_size, dilation, scale):
    x = jnp.transpose(x_ncl, (0, 2, 1)).astype(jnp.float32)       # (B, T, C)
    B, T, _ = x.shape
    nums, K, width, _ = p["wc"].shape
    pad = (K // 2) * dilation

    h = jnp.maximum(x @ p["w1"] + p["b1"], 0.0) * p["bn1_s"] + p["bn1_b"]
    outs = []
    sp = None
    for i in range(nums):
        chunk = h[:, :, i * width:(i + 1) * width]
        sp = chunk if i == 0 else sp + chunk
        padded = jnp.pad(sp, ((0, 0), (pad, pad), (0, 0)))
        conv = jnp.broadcast_to(p["bc"][i][None, None, :], (B, T, width))
        for j in range(K):
            conv = conv + padded[:, j * dilation:j * dilation + T, :] @ p["wc"][i, j]
        sp = jnp.maximum(conv, 0.0) * p["bns_s"][i] + p["bns_b"][i]
        outs.append(sp)
    outs.append(h[:, :, nums * width:])
    out = jnp.concatenate(outs, axis=-1)
    out = jnp.maximum(out @ p["w3"] + p["b3"], 0.0) * p["bn3_s"] + p["bn3_b"]
    pooled = out.mean(axis=1)
    s = jnp.maximum(pooled @ p["se_w1"] + p["se_b1"], 0.0)
    s = jax.nn.sigmoid(s @ p["se_w2"] + p["se_b2"])
    out = out * s[:, None, :]
    out = out + x
    return jnp.transpose(out, (0, 2, 1))


# ----------------------------------------------------------------------------- main
if __name__ == "__main__":
    # NOTE: tiny demo shapes for the correctness check only; tune/benchmark at realistic
    # ECAPA shapes (C=512-1024, width=64-128, T>=1000) where lanes are fully populated.
    B, inplanes, planes, T = 2, 64, 64, 16
    kernel_size, dilation, scale = 3, 2, 8

    key = jax.random.PRNGKey(0)
    kx, kp = jax.random.split(key)
    x = jax.random.normal(kx, (B, inplanes, T), jnp.float32)      # PyTorch NCL input
    params = init_params(kp, inplanes, planes, kernel_size, dilation, scale)

    ref = ref_forward(x, params, kernel_size=kernel_size,
                      dilation=dilation, scale=scale)

    # f32 compute path: tight check against the f32 reference
    out_f32 = bottle2neck_forward(x, params, kernel_size=kernel_size,
                                  dilation=dilation, scale=scale,
                                  compute_dtype=jnp.float32)
    out_f32 = jax.block_until_ready(out_f32)
    np.testing.assert_allclose(np.asarray(out_f32), np.asarray(ref), rtol=1e-4, atol=1e-4)

    # bf16 MXU inputs + bf16 output (perf mode): f32 accumulation/elementwise keeps the
    # error bounded; looser tolerance vs. the f32 reference.
    out_bf16 = bottle2neck_forward(x, params, kernel_size=kernel_size,
                                   dilation=dilation, scale=scale,
                                   compute_dtype=jnp.bfloat16)
    out_bf16 = jax.block_until_ready(out_bf16)
    np.testing.assert_allclose(np.asarray(out_bf16.astype(jnp.float32)), np.asarray(ref),
                               rtol=5e-2, atol=1e-1)

    print("KERNEL_OK")
</pallas_src>

<mosaic_0001>
module attributes {stable_mosaic.version = 11 : i64} {
  func.func @kernel(%arg0: i32, %arg1: memref<1x16x64xf32, #tpu.memory_space<vmem>>, %arg2: memref<64x64xf32, #tpu.memory_space<vmem>>, %arg3: memref<1x64xf32, #tpu.memory_space<vmem>>, %arg4: memref<1x64xf32, #tpu.memory_space<vmem>>, %arg5: memref<1x64xf32, #tpu.memory_space<vmem>>, %arg6: memref<21x8x8xf32, #tpu.memory_space<vmem>>, %arg7: memref<7x8xf32, #tpu.memory_space<vmem>>, %arg8: memref<7x8xf32, #tpu.memory_space<vmem>>, %arg9: memref<7x8xf32, #tpu.memory_space<vmem>>, %arg10: memref<64x64xf32, #tpu.memory_space<vmem>>, %arg11: memref<1x64xf32, #tpu.memory_space<vmem>>, %arg12: memref<1x64xf32, #tpu.memory_space<vmem>>, %arg13: memref<1x64xf32, #tpu.memory_space<vmem>>, %arg14: memref<64x128xf32, #tpu.memory_space<vmem>>, %arg15: memref<1x128xf32, #tpu.memory_space<vmem>>, %arg16: memref<128x64xf32, #tpu.memory_space<vmem>>, %arg17: memref<1x64xf32, #tpu.memory_space<vmem>>, %arg18: memref<1x16x64xf32, #tpu.memory_space<vmem>>, %arg19: memref<20x8xf32, #tpu.memory_space<vmem>>, %arg20: memref<16x64xf32, #tpu.memory_space<vmem>>) attributes {dimension_semantics = [#tpu.dimension_semantics<parallel>], iteration_bounds = array<i64: 2>, scalar_prefetch = 0 : i64, scratch_operands = 2 : i64, tpu.core_type = #tpu.core_type<tc>, window_params = [{transform_indices = @transform_0, window_bounds = array<i64: 1, 16, 64>}, {pipeline_mode = #tpu.pipeline_mode<synchronous>, transform_indices = @transform_1, window_bounds = array<i64: 64, 64>}, {pipeline_mode = #tpu.pipeline_mode<synchronous>, transform_indices = @transform_2, window_bounds = array<i64: 1, 64>}, {pipeline_mode = #tpu.pipeline_mode<synchronous>, transform_indices = @transform_3, window_bounds = array<i64: 1, 64>}, {pipeline_mode = #tpu.pipeline_mode<synchronous>, transform_indices = @transform_4, window_bounds = array<i64: 1, 64>}, {pipeline_mode = #tpu.pipeline_mode<synchronous>, transform_indices = @transform_5, window_bounds = array<i64: 21, 8, 8>}, {pipeline_mode = #tpu.pipeline_mode<synchronous>, transform_indices = @transform_6, window_bounds = array<i64: 7, 8>}, {pipeline_mode = #tpu.pipeline_mode<synchronous>, transform_indices = @transform_7, window_bounds = array<i64: 7, 8>}, {pipeline_mode = #tpu.pipeline_mode<synchronous>, transform_indices = @transform_8, window_bounds = array<i64: 7, 8>}, {pipeline_mode = #tpu.pipeline_mode<synchronous>, transform_indices = @transform_9, window_bounds = array<i64: 64, 64>}, {pipeline_mode = #tpu.pipeline_mode<synchronous>, transform_indices = @transform_10, window_bounds = array<i64: 1, 64>}, {pipeline_mode = #tpu.pipeline_mode<synchronous>, transform_indices = @transform_11, window_bounds = array<i64: 1, 64>}, {pipeline_mode = #tpu.pipeline_mode<synchronous>, transform_indices = @transform_12, window_bounds = array<i64: 1, 64>}, {pipeline_mode = #tpu.pipeline_mode<synchronous>, transform_indices = @transform_13, window_bounds = array<i64: 64, 128>}, {pipeline_mode = #tpu.pipeline_mode<synchronous>, transform_indices = @transform_14, window_bounds = array<i64: 1, 128>}, {pipeline_mode = #tpu.pipeline_mode<synchronous>, transform_indices = @transform_15, window_bounds = array<i64: 128, 64>}, {pipeline_mode = #tpu.pipeline_mode<synchronous>, transform_indices = @transform_16, window_bounds = array<i64: 1, 64>}, {transform_indices = @transform_17, window_bounds = array<i64: 1, 16, 64>}]} {
    %c0 = arith.constant 0 : index
    %c0_0 = arith.constant 0 : index
    %c0_1 = arith.constant 0 : index
    %0 = vector.load %arg1[%c0, %c0_0, %c0_1] : memref<1x16x64xf32, #tpu.memory_space<vmem>>, vector<1x16x64xf32>
    %1 = vector.shape_cast %0 : vector<1x16x64xf32> to vector<16x64xf32>
    %c0_2 = arith.constant 0 : index
    %c0_3 = arith.constant 0 : index
    %2 = vector.load %arg2[%c0_2, %c0_3] : memref<64x64xf32, #tpu.memory_space<vmem>>, vector<64x64xf32>
    %cst = arith.constant dense<0.000000e+00> : vector<16x64xf32>
    %3 = tpu.matmul %1, %2, %cst {dimension_numbers = #tpu.dot_dimension_numbers<[1], [0], [0], [1], [0, 0, 1, 1], [], []>} : vector<16x64xf32>, vector<64x64xf32>, vector<16x64xf32> -> vector<16x64xf32>
    %c0_4 = arith.constant 0 : index
    %c0_5 = arith.constant 0 : index
    %4 = vector.load %arg3[%c0_4, %c0_5] : memref<1x64xf32, #tpu.memory_space<vmem>>, vector<1x64xf32>
    %5 = vector.broadcast %4 : vector<1x64xf32> to vector<16x64xf32>
    %6 = arith.addf %3, %5 : vector<16x64xf32>
    %cst_6 = arith.constant 0.000000e+00 : f32
    %7 = vector.broadcast %cst_6 : f32 to vector<16x64xf32>
    %8 = arith.maximumf %6, %7 : vector<16x64xf32>
    %c0_7 = arith.constant 0 : index
    %c0_8 = arith.constant 0 : index
    %9 = vector.load %arg4[%c0_7, %c0_8] : memref<1x64xf32, #tpu.memory_space<vmem>>, vector<1x64xf32>
    %10 = vector.broadcast %9 : vector<1x64xf32> to vector<16x64xf32>
    %11 = arith.mulf %8, %10 : vector<16x64xf32>
    %c0_9 = arith.constant 0 : index
    %c0_10 = arith.constant 0 : index
    %12 = vector.load %arg5[%c0_9, %c0_10] : memref<1x64xf32, #tpu.memory_space<vmem>>, vector<1x64xf32>
    %13 = vector.broadcast %12 : vector<1x64xf32> to vector<16x64xf32>
    %14 = arith.addf %11, %13 : vector<16x64xf32>
    %cst_11 = arith.constant 0.000000e+00 : f32
    %15 = vector.broadcast %cst_11 : f32 to vector<2x8xf32>
    %c0_12 = arith.constant 0 : index
    %c0_13 = arith.constant 0 : index
    %16 = vector.load %arg19[%c0_12, %c0_13] : memref<20x8xf32, #tpu.memory_space<vmem>>, vector<2x8xf32>
    tpu.vector_store %arg19[%c0_12, %c0_13], %15 {strides = array<i32>} : memref<20x8xf32, #tpu.memory_space<vmem>>, vector<2x8xf32>,
    %c18 = arith.constant 18 : index
    %c0_14 = arith.constant 0 : index
    %17 = vector.load %arg19[%c18, %c0_14] : memref<20x8xf32, #tpu.memory_space<vmem>>, vector<2x8xf32>
    tpu.vector_store %arg19[%c18, %c0_14], %15 {strides = array<i32>} : memref<20x8xf32, #tpu.memory_space<vmem>>, vector<2x8xf32>,
    %18 = vector.extract_strided_slice %14 {offsets = [0, 0], sizes = [16, 8], strides = [1, 1]} : vector<16x64xf32> to vector<16x8xf32>
    %c2 = arith.constant 2 : index
    %c0_15 = arith.constant 0 : index
    %19 = vector.load %arg19[%c2, %c0_15] : memref<20x8xf32, #tpu.memory_space<vmem>>, vector<16x8xf32>
    tpu.vector_store %arg19[%c2, %c0_15], %18 {strides = array<i32>} : memref<20x8xf32, #tpu.memory_space<vmem>>, vector<16x8xf32>,
    %c0_16 = arith.constant 0 : index
    %c0_17 = arith.constant 0 : index
    %20 = vector.load %arg19[%c0_16, %c0_17] : memref<20x8xf32, #tpu.memory_space<vmem>>, vector<16x8xf32>
    %c0_18 = arith.constant 0 : index
    %c0_19 = arith.constant 0 : index
    %c0_20 = arith.constant 0 : index
    %21 = vector.load %arg6[%c0_18, %c0_19, %c0_20] : memref<21x8x8xf32, #tpu.memory_space<vmem>>, vector<1x8x8xf32>
    %22 = vector.shape_cast %21 : vector<1x8x8xf32> to vector<8x8xf32>
    %cst_21 = arith.constant dense<0.000000e+00> : vector<16x8xf32>
    %23 = tpu.matmul %20, %22, %cst_21 {dimension_numbers = #tpu.dot_dimension_numbers<[1], [0], [0], [1], [0, 0, 1, 1], [], []>} : vector<16x8xf32>, vector<8x8xf32>, vector<16x8xf32> -> vector<16x8xf32>
    %c0_22 = arith.constant 0 : index
    %c0_23 = arith.constant 0 : index
    %24 = vector.load %arg7[%c0_22, %c0_23] : memref<7x8xf32, #tpu.memory_space<vmem>>, vector<1x8xf32>
    %25 = vector.shape_cast %24 : vector<1x8xf32> to vector<8xf32>
    %26 = vector.shape_cast %25 : vector<8xf32> to vector<1x8xf32>
    %27 = vector.broadcast %26 : vector<1x8xf32> to vector<16x8xf32>
    %28 = arith.addf %23, %27 : vector<16x8xf32>
    %c2_24 = arith.constant 2 : index
    %c0_25 = arith.constant 0 : index
    %29 = vector.load %arg19[%c2_24, %c0_25] : memref<20x8xf32, #tpu.memory_space<vmem>>, vector<16x8xf32>
    %c1 = arith.constant 1 : index
    %c0_26 = arith.constant 0 : index
    %c0_27 = arith.constant 0 : index
    %30 = vector.load %arg6[%c1, %c0_26, %c0_27] : memref<21x8x8xf32, #tpu.memory_space<vmem>>, vector<1x8x8xf32>
    %31 = vector.shape_cast %30 : vector<1x8x8xf32> to vector<8x8xf32>
    %cst_28 = arith.constant dense<0.000000e+00> : vector<16x8xf32>
    %32 = tpu.matmul %29, %31, %cst_28 {dimension_numbers = #tpu.dot_dimension_numbers<[1], [0], [0], [1], [0, 0, 1, 1], [], []>} : vector<16x8xf32>, vector<8x8xf32>, vector<16x8xf32> -> vector<16x8xf32>
    %33 = arith.addf %28, %32 : vector<16x8xf32>
    %c4 = arith.constant 4 : index
    %c0_29 = arith.constant 0 : index
    %34 = vector.load %arg19[%c4, %c0_29] : memref<20x8xf32, #tpu.memory_space<vmem>>, vector<16x8xf32>
    %c2_30 = arith.constant 2 : index
    %c0_31 = arith.constant 0 : index
    %c0_32 = arith.constant 0 : index
    %35 = vector.load %arg6[%c2_30, %c0_31, %c0_32] : memref<21x8x8xf32, #tpu.memory_space<vmem>>, vector<1x8x8xf32>
    %36 = vector.shape_cast %35 : vector<1x8x8xf32> to vector<8x8xf32>
    %cst_33 = arith.constant dense<0.000000e+00> : vector<16x8xf32>
    %37 = tpu.matmul %34, %36, %cst_33 {dimension_numbers = #tpu.dot_dimension_numbers<[1], [0], [0], [1], [0, 0, 1, 1], [], []>} : vector<16x8xf32>, vector<8x8xf32>, vector<16x8xf32> -> vector<16x8xf32>
    %38 = arith.addf %33, %37 : vector<16x8xf32>
    %cst_34 = arith.constant 0.000000e+00 : f32
    %39 = vector.broadcast %cst_34 : f32 to vector<16x8xf32>
    %40 = arith.maximumf %38, %39 : vector<16x8xf32>
    %c0_35 = arith.constant 0 : index
    %c0_36 = arith.constant 0 : index
    %41 = vector.load %arg8[%c0_35, %c0_36] : memref<7x8xf32, #tpu.memory_space<vmem>>, vector<1x8xf32>
    %42 = vector.shape_cast %41 : vector<1x8xf32> to vector<8xf32>
    %43 = vector.shape_cast %42 : vector<8xf32> to vector<1x8xf32>
    %44 = vector.broadcast %43 : vector<1x8xf32> to vector<16x8xf32>
    %45 = arith.mulf %40, %44 : vector<16x8xf32>
    %c0_37 = arith.constant 0 : index
    %c0_38 = arith.constant 0 : index
    %46 = vector.load %arg9[%c0_37, %c0_38] : memref<7x8xf32, #tpu.memory_space<vmem>>, vector<1x8xf32>
    %47 = vector.shape_cast %46 : vector<1x8xf32> to vector<8xf32>
    %48 = vector.shape_cast %47 : vector<8xf32> to vector<1x8xf32>
    %49 = vector.broadcast %48 : vector<1x8xf32> to vector<16x8xf32>
    %50 = arith.addf %45, %49 : vector<16x8xf32>
    %c0_39 = arith.constant 0 : index
    %c0_40 = arith.constant 0 : index
    %51 = vector.load %arg20[%c0_39, %c0_40] : memref<16x64xf32, #tpu.memory_space<vmem>>, vector<16x8xf32>
    tpu.vector_store %arg20[%c0_39, %c0_40], %50 {strides = array<i32>} : memref<16x64xf32, #tpu.memory_space<vmem>>, vector<16x8xf32>,
    %52 = vector.extract_strided_slice %14 {offsets = [0, 8], sizes = [16, 8], strides = [1, 1]} : vector<16x64xf32> to vector<16x8xf32>
    %53 = arith.addf %50, %52 : vector<16x8xf32>
    %c2_41 = arith.constant 2 : index
    %c0_42 = arith.constant 0 : index
    %54 = vector.load %arg19[%c2_41, %c0_42] : memref<20x8xf32, #tpu.memory_space<vmem>>, vector<16x8xf32>
    tpu.vector_store %arg19[%c2_41, %c0_42], %53 {strides = array<i32>} : memref<20x8xf32, #tpu.memory_space<vmem>>, vector<16x8xf32>,
    %c0_43 = arith.constant 0 : index
    %c0_44 = arith.constant 0 : index
    %55 = vector.load %arg19[%c0_43, %c0_44] : memref<20x8xf32, #tpu.memory_space<vmem>>, vector<16x8xf32>
    %c3 = arith.constant 3 : index
    %c0_45 = arith.constant 0 : index
    %c0_46 = arith.constant 0 : index
    %56 = vector.load %arg6[%c3, %c0_45, %c0_46] : memref<21x8x8xf32, #tpu.memory_space<vmem>>, vector<1x8x8xf32>
    %57 = vector.shape_cast %56 : vector<1x8x8xf32> to vector<8x8xf32>
    %cst_47 = arith.constant dense<0.000000e+00> : vector<16x8xf32>
    %58 = tpu.matmul %55, %57, %cst_47 {dimension_numbers = #tpu.dot_dimension_numbers<[1], [0], [0], [1], [0, 0, 1, 1], [], []>} : vector<16x8xf32>, vector<8x8xf32>, vector<16x8xf32> -> vector<16x8xf32>
    %c1_48 = arith.constant 1 : index
    %c0_49 = arith.constant 0 : index
    %59 = vector.load %arg7[%c1_48, %c0_49] : memref<7x8xf32, #tpu.memory_space<vmem>>, vector<1x8xf32>
    %60 = vector.shape_cast %59 : vector<1x8xf32> to vector<8xf32>
    %61 = vector.shape_cast %60 : vector<8xf32> to vector<1x8xf32>
    %62 = vector.broadcast %61 : vector<1x8xf32> to vector<16x8xf32>
    %63 = arith.addf %58, %62 : vector<16x8xf32>
    %c2_50 = arith.constant 2 : index
    %c0_51 = arith.constant 0 : index
    %64 = vector.load %arg19[%c2_50, %c0_51] : memref<20x8xf32, #tpu.memory_space<vmem>>, vector<16x8xf32>
    %c4_52 = arith.constant 4 : index
    %c0_53 = arith.constant 0 : index
    %c0_54 = arith.constant 0 : index
    %65 = vector.load %arg6[%c4_52, %c0_53, %c0_54] : memref<21x8x8xf32, #tpu.memory_space<vmem>>, vector<1x8x8xf32>
    %66 = vector.shape_cast %65 : vector<1x8x8xf32> to vector<8x8xf32>
    %cst_55 = arith.constant dense<0.000000e+00> : vector<16x8xf32>
    %67 = tpu.matmul %64, %66, %cst_55 {dimension_numbers = #tpu.dot_dimension_numbers<[1], [0], [0], [1], [0, 0, 1, 1], [], []>} : vector<16x8xf32>, vector<8x8xf32>, vector<16x8xf32> -> vector<16x8xf32>
    %68 = arith.addf %63, %67 : vector<16x8xf32>
    %c4_56 = arith.constant 4 : index
    %c0_57 = arith.constant 0 : index
    %69 = vector.load %arg19[%c4_56, %c0_57] : memref<20x8xf32, #tpu.memory_space<vmem>>, vector<16x8xf32>
    %c5 = arith.constant 5 : index
    %c0_58 = arith.constant 0 : index
    %c0_59 = arith.constant 0 : index
    %70 = vector.load %arg6[%c5, %c0_58, %c0_59] : memref<21x8x8xf32, #tpu.memory_space<vmem>>, vector<1x8x8xf32>
    %71 = vector.shape_cast %70 : vector<1x8x8xf32> to vector<8x8xf32>
    %cst_60 = arith.constant dense<0.000000e+00> : vector<16x8xf32>
    %72 = tpu.matmul %69, %71, %cst_60 {dimension_numbers = #tpu.dot_dimension_numbers<[1], [0], [0], [1], [0, 0, 1, 1], [], []>} : vector<16x8xf32>, vector<8x8xf32>, vector<16x8xf32> -> vector<16x8xf32>
    %73 = arith.addf %68, %72 : vector<16x8xf32>
    %cst_61 = arith.constant 0.000000e+00 : f32
    %74 = vector.broadcast %cst_61 : f32 to vector<16x8xf32>
    %75 = arith.maximumf %73, %74 : vector<16x8xf32>
    %c1_62 = arith.constant 1 : index
    %c0_63 = arith.constant 0 : index
    %76 = vector.load %arg8[%c1_62, %c0_63] : memref<7x8xf32, #tpu.memory_space<vmem>>, vector<1x8xf32>
    %77 = vector.shape_cast %76 : vector<1x8xf32> to vector<8xf32>
    %78 = vector.shape_cast %77 : vector<8xf32> to vector<1x8xf32>
    %79 = vector.broadcast %78 : vector<1x8xf32> to vector<16x8xf32>
    %80 = arith.mulf %75, %79 : vector<16x8xf32>
    %c1_64 = arith.constant 1 : index
    %c0_65 = arith.constant 0 : index
    %81 = vector.load %arg9[%c1_64, %c0_65] : memref<7x8xf32, #tpu.memory_space<vmem>>, vector<1x8xf32>
    %82 = vector.shape_cast %81 : vector<1x8xf32> to vector<8xf32>
    %83 = vector.shape_cast %82 : vector<8xf32> to vector<1x8xf32>
    %84 = vector.broadcast %83 : vector<1x8xf32> to vector<16x8xf32>
    %85 = arith.addf %80, %84 : vector<16x8xf32>
    %c0_66 = arith.constant 0 : index
    %c8 = arith.constant 8 : index
    %86 = vector.load %arg20[%c0_66, %c8] : memref<16x64xf32, #tpu.memory_space<vmem>>, vector<16x8xf32>
    tpu.vector_store %arg20[%c0_66, %c8], %85 {strides = array<i32>} : memref<16x64xf32, #tpu.memory_space<vmem>>, vector<16x8xf32>,
    %87 = vector.extract_strided_slice %14 {offsets = [0, 16], sizes = [16, 8], strides = [1, 1]} : vector<16x64xf32> to vector<16x8xf32>
    %88 = arith.addf %85, %87 : vector<16x8xf32>
    %c2_67 = arith.constant 2 : index
    %c0_68 = arith.constant 0 : index
    %89 = vector.load %arg19[%c2_67, %c0_68] : memref<20x8xf32, #tpu.memory_space<vmem>>, vector<16x8xf32>
    tpu.vector_store %arg19[%c2_67, %c0_68], %88 {strides = array<i32>} : memref<20x8xf32, #tpu.memory_space<vmem>>, vector<16x8xf32>,
    %c0_69 = arith.constant 0 : index
    %c0_70 = arith.constant 0 : index
    %90 = vector.load %arg19[%c0_69, %c0_70] : memref<20x8xf32, #tpu.memory_space<vmem>>, vector<16x8xf32>
    %c6 = arith.constant 6 : index
    %c0_71 = arith.constant 0 : index
    %c0_72 = arith.constant 0 : index
    %91 = vector.load %arg6[%c6, %c0_71, %c0_72] : memref<21x8x8xf32, #tpu.memory_space<vmem>>, vector<1x8x8xf32>
    %92 = vector.shape_cast %91 : vector<1x8x8xf32> to vector<8x8xf32>
    %cst_73 = arith.constant dense<0.000000e+00> : vector<16x8xf32>
    %93 = tpu.matmul %90, %92, %cst_73 {dimension_numbers = #tpu.dot_dimension_numbers<[1], [0], [0], [1], [0, 0, 1, 1], [], []>} : vector<16x8xf32>, vector<8x8xf32>, vector<16x8xf32> -> vector<16x8xf32>
    %c2_74 = arith.constant 2 : index
    %c0_75 = arith.constant 0 : index
    %94 = vector.load %arg7[%c2_74, %c0_75] : memref<7x8xf32, #tpu.memory_space<vmem>>, vector<1x8xf32>
    %95 = vector.shape_cast %94 : vector<1x8xf32> to vector<8xf32>
    %96 = vector.shape_cast %95 : vector<8xf32> to vector<1x8xf32>
    %97 = vector.broadcast %96 : vector<1x8xf32> to vector<16x8xf32>
    %98 = arith.addf %93, %97 : vector<16x8xf32>
    %c2_76 = arith.constant 2 : index
    %c0_77 = arith.constant 0 : index
    %99 = vector.load %arg19[%c2_76, %c0_77] : memref<20x8xf32, #tpu.memory_space<vmem>>, vector<16x8xf32>
    %c7 = arith.constant 7 : index
    %c0_78 = arith.constant 0 : index
    %c0_79 = arith.constant 0 : index
    %100 = vector.load %arg6[%c7, %c0_78, %c0_79] : memref<21x8x8xf32, #tpu.memory_space<vmem>>, vector<1x8x8xf32>
    %101 = vector.shape_cast %100 : vector<1x8x8xf32> to vector<8x8xf32>
    %cst_80 = arith.constant dense<0.000000e+00> : vector<16x8xf32>
    %102 = tpu.matmul %99, %101, %cst_80 {dimension_numbers = #tpu.dot_dimension_numbers<[1], [0], [0], [1], [0, 0, 1, 1], [], []>} : vector<16x8xf32>, vector<8x8xf32>, vector<16x8xf32> -> vector<16x8xf32>
    %103 = arith.addf %98, %102 : vector<16x8xf32>
    %c4_81 = arith.constant 4 : index
    %c0_82 = arith.constant 0 : index
    %104 = vector.load %arg19[%c4_81, %c0_82] : memref<20x8xf32, #tpu.memory_space<vmem>>, vector<16x8xf32>
    %c8_83 = arith.constant 8 : index
    %c0_84 = arith.constant 0 : index
    %c0_85 = arith.constant 0 : index
    %105 = vector.load %arg6[%c8_83, %c0_84, %c0_85] : memref<21x8x8xf32, #tpu.memory_space<vmem>>, vector<1x8x8xf32>
    %106 = vector.shape_cast %105 : vector<1x8x8xf32> to vector<8x8xf32>
    %cst_86 = arith.constant dense<0.000000e+00> : vector<16x8xf32>
    %107 = tpu.matmul %104, %106, %cst_86 {dimension_numbers = #tpu.dot_dimension_numbers<[1], [0], [0], [1], [0, 0, 1, 1], [], []>} : vector<16x8xf32>, vector<8x8xf32>, vector<16x8xf32> -> vector<16x8xf32>
    %108 = arith.addf %103, %107 : vector<16x8xf32>
    %cst_87 = arith.constant 0.000000e+00 : f32
    %109 = vector.broadcast %cst_87 : f32 to vector<16x8xf32>
    %110 = arith.maximumf %108, %109 : vector<16x8xf32>
    %c2_88 = arith.constant 2 : index
    %c0_89 = arith.constant 0 : index
    %111 = vector.load %arg8[%c2_88, %c0_89] : memref<7x8xf32, #tpu.memory_space<vmem>>, vector<1x8xf32>
    %112 = vector.shape_cast %111 : vector<1x8xf32> to vector<8xf32>
    %113 = vector.shape_cast %112 : vector<8xf32> to vector<1x8xf32>
    %114 = vector.broadcast %113 : vector<1x8xf32> to vector<16x8xf32>
    %115 = arith.mulf %110, %114 : vector<16x8xf32>
    %c2_90 = arith.constant 2 : index
    %c0_91 = arith.constant 0 : index
    %116 = vector.load %arg9[%c2_90, %c0_91] : memref<7x8xf32, #tpu.memory_space<vmem>>, vector<1x8xf32>
    %117 = vector.shape_cast %116 : vector<1x8xf32> to vector<8xf32>
    %118 = vector.shape_cast %117 : vector<8xf32> to vector<1x8xf32>
    %119 = vector.broadcast %118 : vector<1x8xf32> to vector<16x8xf32>
    %120 = arith.addf %115, %119 : vector<16x8xf32>
    %c0_92 = arith.constant 0 : index
    %c16 = arith.constant 16 : index
    %121 = vector.load %arg20[%c0_92, %c16] : memref<16x64xf32, #tpu.memory_space<vmem>>, vector<16x8xf32>
    tpu.vector_store %arg20[%c0_92, %c16], %120 {strides = array<i32>} : memref<16x64xf32, #tpu.memory_space<vmem>>, vector<16x8xf32>,
    %122 = vector.extract_strided_slice %14 {offsets = [0, 24], sizes = [16, 8], strides = [1, 1]} : vector<16x64xf32> to vector<16x8xf32>
    %123 = arith.addf %120, %122 : vector<16x8xf32>
    %c2_93 = arith.constant 2 : index
    %c0_94 = arith.constant 0 : index
    %124 = vector.load %arg19[%c2_93, %c0_94] : memref<20x8xf32, #tpu.memory_space<vmem>>, vector<16x8xf32>
    tpu.vector_store %arg19[%c2_93, %c0_94], %123 {strides = array<i32>} : memref<20x8xf32, #tpu.memory_space<vmem>>, vector<16x8xf32>,
    %c0_95 = arith.constant 0 : index
    %c0_96 = arith.constant 0 : index
    %125 = vector.load %arg19[%c0_95, %c0_96] : memref<20x8xf32, #tpu.memory_space<vmem>>, vector<16x8xf32>
    %c9 = arith.constant 9 : index
    %c0_97 = arith.constant 0 : index
    %c0_98 = arith.constant 0 : index
    %126 = vector.load %arg6[%c9, %c0_97, %c0_98] : memref<21x8x8xf32, #tpu.memory_space<vmem>>, vector<1x8x8xf32>
    %127 = vector.shape_cast %126 : vector<1x8x8xf32> to vector<8x8xf32>
    %cst_99 = arith.constant dense<0.000000e+00> : vector<16x8xf32>
    %128 = tpu.matmul %125, %127, %cst_99 {dimension_numbers = #tpu.dot_dimension_numbers<[1], [0], [0], [1], [0, 0, 1, 1], [], []>} : vector<16x8xf32>, vector<8x8xf32>, vector<16x8xf32> -> vector<16x8xf32>
    %c3_100 = arith.constant 3 : index
    %c0_101 = arith.constant 0 : index
    %129 = vector.load %arg7[%c3_100, %c0_101] : memref<7x8xf32, #tpu.memory_space<vmem>>, vector<1x8xf32>
    %130 = vector.shape_cast %129 : vector<1x8xf32> to vector<8xf32>
    %131 = vector.shape_cast %130 : vector<8xf32> to vector<1x8xf32>
    %132 = vector.broadcast %131 : vector<1x8xf32> to vector<16x8xf32>
    %133 = arith.addf %128, %132 : vector<16x8xf32>
    %c2_102 = arith.constant 2 : index
    %c0_103 = arith.constant 0 : index
    %134 = vector.load %arg19[%c2_102, %c0_103] : memref<20x8xf32, #tpu.memory_space<vmem>>, vector<16x8xf32>
    %c10 = arith.constant 10 : index
    %c0_104 = arith.constant 0 : index
    %c0_105 = arith.constant 0 : index
    %135 = vector.load %arg6[%c10, %c0_104, %c0_105] : memref<21x8x8xf32, #tpu.memory_space<vmem>>, vector<1x8x8xf32>
    %136 = vector.shape_cast %135 : vector<1x8x8xf32> to vector<8x8xf32>
    %cst_106 = arith.constant dense<0.000000e+00> : vector<16x8xf32>
    %137 = tpu.matmul %134, %136, %cst_106 {dimension_numbers = #tpu.dot_dimension_numbers<[1], [0], [0], [1], [0, 0, 1, 1], [], []>} : vector<16x8xf32>, vector<8x8xf32>, vector<16x8xf32> -> vector<16x8xf32>
    %138 = arith.addf %133, %137 : vector<16x8xf32>
    %c4_107 = arith.constant 4 : index
    %c0_108 = arith.constant 0 : index
    %139 = vector.load %arg19[%c4_107, %c0_108] : memref<20x8xf32, #tpu.memory_space<vmem>>, vector<16x8xf32>
    %c11 = arith.constant 11 : index
    %c0_109 = arith.constant 0 : index
    %c0_110 = arith.constant 0 : index
    %140 = vector.load %arg6[%c11, %c0_109, %c0_110] : memref<21x8x8xf32, #tpu.memory_space<vmem>>, vector<1x8x8xf32>
    %141 = vector.shape_cast %140 : vector<1x8x8xf32> to vector<8x8xf32>
    %cst_111 = arith.constant dense<0.000000e+00> : vector<16x8xf32>
    %142 = tpu.matmul %139, %141, %cst_111 {dimension_numbers = #tpu.dot_dimension_numbers<[1], [0], [0], [1], [0, 0, 1, 1], [], []>} : vector<16x8xf32>, vector<8x8xf32>, vector<16x8xf32> -> vector<16x8xf32>
    %143 = arith.addf %138, %142 : vector<16x8xf32>
    %cst_112 = arith.constant 0.000000e+00 : f32
    %144 = vector.broadcast %cst_112 : f32 to vector<16x8xf32>
    %145 = arith.maximumf %143, %144 : vector<16x8xf32>
    %c3_113 = arith.constant 3 : index
    %c0_114 = arith.constant 0 : index
    %146 = vector.load %arg8[%c3_113, %c0_114] : memref<7x8xf32, #tpu.memory_space<vmem>>, vector<1x8xf32>
    %147 = vector.shape_cast %146 : vector<1x8xf32> to vector<8xf32>
    %148 = vector.shape_cast %147 : vector<8xf32> to vector<1x8xf32>
    %149 = vector.broadcast %148 : vector<1x8xf32> to vector<16x8xf32>
    %150 = arith.mulf %145, %149 : vector<16x8xf32>
    %c3_115 = arith.constant 3 : index
    %c0_116 = arith.constant 0 : index
    %151 = vector.load %arg9[%c3_115, %c0_116] : memref<7x8xf32, #tpu.memory_space<vmem>>, vector<1x8xf32>
    %152 = vector.shape_cast %151 : vector<1x8xf32> to vector<8xf32>
    %153 = vector.shape_cast %152 : vector<8xf32> to vector<1x8xf32>
    %154 = vector.broadcast %153 : vector<1x8xf32> to vector<16x8xf32>
    %155 = arith.addf %150, %154 : vector<16x8xf32>
    %c0_117 = arith.constant 0 : index
    %c24 = arith.constant 24 : index
    %156 = vector.load %arg20[%c0_117, %c24] : memref<16x64xf32, #tpu.memory_space<vmem>>, vector<16x8xf32>
    tpu.vector_store %arg20[%c0_117, %c24], %155 {strides = array<i32>} : memref<16x64xf32, #tpu.memory_space<vmem>>, vector<16x8xf32>,
    %157 = vector.extract_strided_slice %14 {offsets = [0, 32], sizes = [16, 8], strides = [1, 1]} : vector<16x64xf32> to vector<16x8xf32>
    %158 = arith.addf %155, %157 : vector<16x8xf32>
    %c2_118 = arith.constant 2 : index
    %c0_119 = arith.constant 0 : index
    %159 = vector.load %arg19[%c2_118, %c0_119] : memref<20x8xf32, #tpu.memory_space<vmem>>, vector<16x8xf32>
    tpu.vector_store %arg19[%c2_118, %c0_119], %158 {strides = array<i32>} : memref<20x8xf32, #tpu.memory_space<vmem>>, vector<16x8xf32>,
    %c0_120 = arith.constant 0 : index
    %c0_121 = arith.constant 0 : index
    %160 = vector.load %arg19[%c0_120, %c0_121] : memref<20x8xf32, #tpu.memory_space<vmem>>, vector<16x8xf32>
    %c12 = arith.constant 12 : index
    %c0_122 = arith.constant 0 : index
    %c0_123 = arith.constant 0 : index
    %161 = vector.load %arg6[%c12, %c0_122, %c0_123] : memref<21x8x8xf32, #tpu.memory_space<vmem>>, vector<1x8x8xf32>
    %162 = vector.shape_cast %161 : vector<1x8x8xf32> to vector<8x8xf32>
    %cst_124 = arith.constant dense<0.000000e+00> : vector<16x8xf32>
    %163 = tpu.matmul %160, %162, %cst_124 {dimension_numbers = #tpu.dot_dimension_numbers<[1], [0], [0], [1], [0, 0, 1, 1], [], []>} : vector<16x8xf32>, vector<8x8xf32>, vector<16x8xf32> -> vector<16x8xf32>
    %c4_125 = arith.constant 4 : index
    %c0_126 = arith.constant 0 : index
    %164 = vector.load %arg7[%c4_125, %c0_126] : memref<7x8xf32, #tpu.memory_space<vmem>>, vector<1x8xf32>
    %165 = vector.shape_cast %164 : vector<1x8xf32> to vector<8xf32>
    %166 = vector.shape_cast %165 : vector<8xf32> to vector<1x8xf32>
    %167 = vector.broadcast %166 : vector<1x8xf32> to vector<16x8xf32>
    %168 = arith.addf %163, %167 : vector<16x8xf32>
    %c2_127 = arith.constant 2 : index
    %c0_128 = arith.constant 0 : index
    %169 = vector.load %arg19[%c2_127, %c0_128] : memref<20x8xf32, #tpu.memory_space<vmem>>, vector<16x8xf32>
    %c13 = arith.constant 13 : index
    %c0_129 = arith.constant 0 : index
    %c0_130 = arith.constant 0 : index
    %170 = vector.load %arg6[%c13, %c0_129, %c0_130] : memref<21x8x8xf32, #tpu.memory_space<vmem>>, vector<1x8x8xf32>
    %171 = vector.shape_cast %170 : vector<1x8x8xf32> to vector<8x8xf32>
    %cst_131 = arith.constant dense<0.000000e+00> : vector<16x8xf32>
    %172 = tpu.matmul %169, %171, %cst_131 {dimension_numbers = #tpu.dot_dimension_numbers<[1], [0], [0], [1], [0, 0, 1, 1], [], []>} : vector<16x8xf32>, vector<8x8xf32>, vector<16x8xf32> -> vector<16x8xf32>
    %173 = arith.addf %168, %172 : vector<16x8xf32>
    %c4_132 = arith.constant 4 : index
    %c0_133 = arith.constant 0 : index
    %174 = vector.load %arg19[%c4_132, %c0_133] : memref<20x8xf32, #tpu.memory_space<vmem>>, vector<16x8xf32>
    %c14 = arith.constant 14 : index
    %c0_134 = arith.constant 0 : index
    %c0_135 = arith.constant 0 : index
    %175 = vector.load %arg6[%c14, %c0_134, %c0_135] : memref<21x8x8xf32, #tpu.memory_space<vmem>>, vector<1x8x8xf32>
    %176 = vector.shape_cast %175 : vector<1x8x8xf32> to vector<8x8xf32>
    %cst_136 = arith.constant dense<0.000000e+00> : vector<16x8xf32>
    %177 = tpu.matmul %174, %176, %cst_136 {dimension_numbers = #tpu.dot_dimension_numbers<[1], [0], [0], [1], [0, 0, 1, 1], [], []>} : vector<16x8xf32>, vector<8x8xf32>, vector<16x8xf32> -> vector<16x8xf32>
    %178 = arith.addf %173, %177 : vector<16x8xf32>
    %cst_137 = arith.constant 0.000000e+00 : f32
    %179 = vector.broadcast %cst_137 : f32 to vector<16x8xf32>
    %180 = arith.maximumf %178, %179 : vector<16x8xf32>
    %c4_138 = arith.constant 4 : index
    %c0_139 = arith.constant 0 : index
    %181 = vector.load %arg8[%c4_138, %c0_139] : memref<7x8xf32, #tpu.memory_space<vmem>>, vector<1x8xf32>
    %182 = vector.shape_cast %181 : vector<1x8xf32> to vector<8xf32>
    %183 = vector.shape_cast %182 : vector<8xf32> to vector<1x8xf32>
    %184 = vector.broadcast %183 : vector<1x8xf32> to vector<16x8xf32>
    %185 = arith.mulf %180, %184 : vector<16x8xf32>
    %c4_140 = arith.constant 4 : index
    %c0_141 = arith.constant 0 : index
    %186 = vector.load %arg9[%c4_140, %c0_141] : memref<7x8xf32, #tpu.memory_space<vmem>>, vector<1x8xf32>
    %187 = vector.shape_cast %186 : vector<1x8xf32> to vector<8xf32>
    %188 = vector.shape_cast %187 : vector<8xf32> to vector<1x8xf32>
    %189 = vector.broadcast %188 : vector<1x8xf32> to vector<16x8xf32>
    %190 = arith.addf %185, %189 : vector<16x8xf32>
    %c0_142 = arith.constant 0 : index
    %c32 = arith.constant 32 : index
    %191 = vector.load %arg20[%c0_142, %c32] : memref<16x64xf32, #tpu.memory_space<vmem>>, vector<16x8xf32>
    tpu.vector_store %arg20[%c0_142, %c32], %190 {strides = array<i32>} : memref<16x64xf32, #tpu.memory_space<vmem>>, vector<16x8xf32>,
    %192 = vector.extract_strided_slice %14 {offsets = [0, 40], sizes = [16, 8], strides = [1, 1]} : vector<16x64xf32> to vector<16x8xf32>
    %193 = arith.addf %190, %192 : vector<16x8xf32>
    %c2_143 = arith.constant 2 : index
    %c0_144 = arith.constant 0 : index
    %194 = vector.load %arg19[%c2_143, %c0_144] : memref<20x8xf32, #tpu.memory_space<vmem>>, vector<16x8xf32>
    tpu.vector_store %arg19[%c2_143, %c0_144], %193 {strides = array<i32>} : memref<20x8xf32, #tpu.memory_space<vmem>>, vector<16x8xf32>,
    %c0_145 = arith.constant 0 : index
    %c0_146 = arith.constant 0 : index
    %195 = vector.load %arg19[%c0_145, %c0_146] : memref<20x8xf32, #tpu.memory_space<vmem>>, vector<16x8xf32>
    %c15 = arith.constant 15 : index
    %c0_147 = arith.constant 0 : index
    %c0_148 = arith.constant 0 : index
    %196 = vector.load %arg6[%c15, %c0_147, %c0_148] : memref<21x8x8xf32, #tpu.memory_space<vmem>>, vector<1x8x8xf32>
    %197 = vector.shape_cast %196 : vector<1x8x8xf32> to vector<8x8xf32>
    %cst_149 = arith.constant dense<0.000000e+00> : vector<16x8xf32>
    %198 = tpu.matmul %195, %197, %cst_149 {dimension_numbers = #tpu.dot_dimension_numbers<[1], [0], [0], [1], [0, 0, 1, 1], [], []>} : vector<16x8xf32>, vector<8x8xf32>, vector<16x8xf32> -> vector<16x8xf32>
    %c5_150 = arith.constant 5 : index
    %c0_151 = arith.constant 0 : index
    %199 = vector.load %arg7[%c5_150, %c0_151] : memref<7x8xf32, #tpu.memory_space<vmem>>, vector<1x8xf32>
    %200 = vector.shape_cast %199 : vector<1x8xf32> to vector<8xf32>
    %201 = vector.shape_cast %200 : vector<8xf32> to vector<1x8xf32>
    %202 = vector.broadcast %201 : vector<1x8xf32> to vector<16x8xf32>
    %203 = arith.addf %198, %202 : vector<16x8xf32>
    %c2_152 = arith.constant 2 : index
    %c0_153 = arith.constant 0 : index
    %204 = vector.load %arg19[%c2_152, %c0_153] : memref<20x8xf32, #tpu.memory_space<vmem>>, vector<16x8xf32>
    %c16_154 = arith.constant 16 : index
    %c0_155 = arith.constant 0 : index
    %c0_156 = arith.constant 0 : index
    %205 = vector.load %arg6[%c16_154, %c0_155, %c0_156] : memref<21x8x8xf32, #tpu.memory_space<vmem>>, vector<1x8x8xf32>
    %206 = vector.shape_cast %205 : vector<1x8x8xf32> to vector<8x8xf32>
    %cst_157 = arith.constant dense<0.000000e+00> : vector<16x8xf32>
    %207 = tpu.matmul %204, %206, %cst_157 {dimension_numbers = #tpu.dot_dimension_numbers<[1], [0], [0], [1], [0, 0, 1, 1], [], []>} : vector<16x8xf32>, vector<8x8xf32>, vector<16x8xf32> -> vector<16x8xf32>
    %208 = arith.addf %203, %207 : vector<16x8xf32>
    %c4_158 = arith.constant 4 : index
    %c0_159 = arith.constant 0 : index
    %209 = vector.load %arg19[%c4_158, %c0_159] : memref<20x8xf32, #tpu.memory_space<vmem>>, vector<16x8xf32>
    %c17 = arith.constant 17 : index
    %c0_160 = arith.constant 0 : index
    %c0_161 = arith.constant 0 : index
    %210 = vector.load %arg6[%c17, %c0_160, %c0_161] : memref<21x8x8xf32, #tpu.memory_space<vmem>>, vector<1x8x8xf32>
    %211 = vector.shape_cast %210 : vector<1x8x8xf32> to vector<8x8xf32>
    %cst_162 = arith.constant dense<0.000000e+00> : vector<16x8xf32>
    %212 = tpu.matmul %209, %211, %cst_162 {dimension_numbers = #tpu.dot_dimension_numbers<[1], [0], [0], [1], [0, 0, 1, 1], [], []>} : vector<16x8xf32>, vector<8x8xf32>, vector<16x8xf32> -> vector<16x8xf32>
    %213 = arith.addf %208, %212 : vector<16x8xf32>
    %cst_163 = arith.constant 0.000000e+00 : f32
    %214 = vector.broadcast %cst_163 : f32 to vector<16x8xf32>
    %215 = arith.maximumf %213, %214 : vector<16x8xf32>
    %c5_164 = arith.constant 5 : index
    %c0_165 = arith.constant 0 : index
    %216 = vector.load %arg8[%c5_164, %c0_165] : memref<7x8xf32, #tpu.memory_space<vmem>>, vector<1x8xf32>
    %217 = vector.shape_cast %216 : vector<1x8xf32> to vector<8xf32>
    %218 = vector.shape_cast %217 : vector<8xf32> to vector<1x8xf32>
    %219 = vector.broadcast %218 : vector<1x8xf32> to vector<16x8xf32>
    %220 = arith.mulf %215, %219 : vector<16x8xf32>
    %c5_166 = arith.constant 5 : index
    %c0_167 = arith.constant 0 : index
    %221 = vector.load %arg9[%c5_166, %c0_167] : memref<7x8xf32, #tpu.memory_space<vmem>>, vector<1x8xf32>
    %222 = vector.shape_cast %221 : vector<1x8xf32> to vector<8xf32>
    %223 = vector.shape_cast %222 : vector<8xf32> to vector<1x8xf32>
    %224 = vector.broadcast %223 : vector<1x8xf32> to vector<16x8xf32>
    %225 = arith.addf %220, %224 : vector<16x8xf32>
    %c0_168 = arith.constant 0 : index
    %c40 = arith.constant 40 : index
    %226 = vector.load %arg20[%c0_168, %c40] : memref<16x64xf32, #tpu.memory_space<vmem>>, vector<16x8xf32>
    tpu.vector_store %arg20[%c0_168, %c40], %225 {strides = array<i32>} : memref<16x64xf32, #tpu.memory_space<vmem>>, vector<16x8xf32>,
    %227 = vector.extract_strided_slice %14 {offsets = [0, 48], sizes = [16, 8], strides = [1, 1]} : vector<16x64xf32> to vector<16x8xf32>
    %228 = arith.addf %225, %227 : vector<16x8xf32>
    %c2_169 = arith.constant 2 : index
    %c0_170 = arith.constant 0 : index
    %229 = vector.load %arg19[%c2_169, %c0_170] : memref<20x8xf32, #tpu.memory_space<vmem>>, vector<16x8xf32>
    tpu.vector_store %arg19[%c2_169, %c0_170], %228 {strides = array<i32>} : memref<20x8xf32, #tpu.memory_space<vmem>>, vector<16x8xf32>,
    %c0_171 = arith.constant 0 : index
    %c0_172 = arith.constant 0 : index
    %230 = vector.load %arg19[%c0_171, %c0_172] : memref<20x8xf32, #tpu.memory_space<vmem>>, vector<16x8xf32>
    %c18_173 = arith.constant 18 : index
    %c0_174 = arith.constant 0 : index
    %c0_175 = arith.constant 0 : index
    %231 = vector.load %arg6[%c18_173, %c0_174, %c0_175] : memref<21x8x8xf32, #tpu.memory_space<vmem>>, vector<1x8x8xf32>
    %232 = vector.shape_cast %231 : vector<1x8x8xf32> to vector<8x8xf32>
    %cst_176 = arith.constant dense<0.000000e+00> : vector<16x8xf32>
    %233 = tpu.matmul %230, %232, %cst_176 {dimension_numbers = #tpu.dot_dimension_numbers<[1], [0], [0], [1], [0, 0, 1, 1], [], []>} : vector<16x8xf32>, vector<8x8xf32>, vector<16x8xf32> -> vector<16x8xf32>
    %c6_177 = arith.constant 6 : index
    %c0_178 = arith.constant 0 : index
    %234 = vector.load %arg7[%c6_177, %c0_178] : memref<7x8xf32, #tpu.memory_space<vmem>>, vector<1x8xf32>
    %235 = vector.shape_cast %234 : vector<1x8xf32> to vector<8xf32>
    %236 = vector.shape_cast %235 : vector<8xf32> to vector<1x8xf32>
    %237 = vector.broadcast %236 : vector<1x8xf32> to vector<16x8xf32>
    %238 = arith.addf %233, %237 : vector<16x8xf32>
    %c2_179 = arith.constant 2 : index
    %c0_180 = arith.constant 0 : index
    %239 = vector.load %arg19[%c2_179, %c0_180] : memref<20x8xf32, #tpu.memory_space<vmem>>, vector<16x8xf32>
    %c19 = arith.constant 19 : index
    %c0_181 = arith.constant 0 : index
    %c0_182 = arith.constant 0 : index
    %240 = vector.load %arg6[%c19, %c0_181, %c0_182] : memref<21x8x8xf32, #tpu.memory_space<vmem>>, vector<1x8x8xf32>
    %241 = vector.shape_cast %240 : vector<1x8x8xf32> to vector<8x8xf32>
    %cst_183 = arith.constant dense<0.000000e+00> : vector<16x8xf32>
    %242 = tpu.matmul %239, %241, %cst_183 {dimension_numbers = #tpu.dot_dimension_numbers<[1], [0], [0], [1], [0, 0, 1, 1], [], []>} : vector<16x8xf32>, vector<8x8xf32>, vector<16x8xf32> -> vector<16x8xf32>
    %243 = arith.addf %238, %242 : vector<16x8xf32>
    %c4_184 = arith.constant 4 : index
    %c0_185 = arith.constant 0 : index
    %244 = vector.load %arg19[%c4_184, %c0_185] : memref<20x8xf32, #tpu.memory_space<vmem>>, vector<16x8xf32>
    %c20 = arith.constant 20 : index
    %c0_186 = arith.constant 0 : index
    %c0_187 = arith.constant 0 : index
    %245 = vector.load %arg6[%c20, %c0_186, %c0_187] : memref<21x8x8xf32, #tpu.memory_space<vmem>>, vector<1x8x8xf32>
    %246 = vector.shape_cast %245 : vector<1x8x8xf32> to vector<8x8xf32>
    %cst_188 = arith.constant dense<0.000000e+00> : vector<16x8xf32>
    %247 = tpu.matmul %244, %246, %cst_188 {dimension_numbers = #tpu.dot_dimension_numbers<[1], [0], [0], [1], [0, 0, 1, 1], [], []>} : vector<16x8xf32>, vector<8x8xf32>, vector<16x8xf32> -> vector<16x8xf32>
    %248 = arith.addf %243, %247 : vector<16x8xf32>
    %cst_189 = arith.constant 0.000000e+00 : f32
    %249 = vector.broadcast %cst_189 : f32 to vector<16x8xf32>
    %250 = arith.maximumf %248, %249 : vector<16x8xf32>
    %c6_190 = arith.constant 6 : index
    %c0_191 = arith.constant 0 : index
    %251 = vector.load %arg8[%c6_190, %c0_191] : memref<7x8xf32, #tpu.memory_space<vmem>>, vector<1x8xf32>
    %252 = vector.shape_cast %251 : vector<1x8xf32> to vector<8xf32>
    %253 = vector.shape_cast %252 : vector<8xf32> to vector<1x8xf32>
    %254 = vector.broadcast %253 : vector<1x8xf32> to vector<16x8xf32>
    %255 = arith.mulf %250, %254 : vector<16x8xf32>
    %c6_192 = arith.constant 6 : index
    %c0_193 = arith.constant 0 : index
    %256 = vector.load %arg9[%c6_192, %c0_193] : memref<7x8xf32, #tpu.memory_space<vmem>>, vector<1x8xf32>
    %257 = vector.shape_cast %256 : vector<1x8xf32> to vector<8xf32>
    %258 = vector.shape_cast %257 : vector<8xf32> to vector<1x8xf32>
    %259 = vector.broadcast %258 : vector<1x8xf32> to vector<16x8xf32>
    %260 = arith.addf %255, %259 : vector<16x8xf32>
    %c0_194 = arith.constant 0 : index
    %c48 = arith.constant 48 : index
    %261 = vector.load %arg20[%c0_194, %c48] : memref<16x64xf32, #tpu.memory_space<vmem>>, vector<16x8xf32>
    tpu.vector_store %arg20[%c0_194, %c48], %260 {strides = array<i32>} : memref<16x64xf32, #tpu.memory_space<vmem>>, vector<16x8xf32>,
    %262 = vector.extract_strided_slice %14 {offsets = [0, 56], sizes = [16, 8], strides = [1, 1]} : vector<16x64xf32> to vector<16x8xf32>
    %c0_195 = arith.constant 0 : index
    %c56 = arith.constant 56 : index
    %263 = vector.load %arg20[%c0_195, %c56] : memref<16x64xf32, #tpu.memory_space<vmem>>, vector<16x8xf32>
    tpu.vector_store %arg20[%c0_195, %c56], %262 {strides = array<i32>} : memref<16x64xf32, #tpu.memory_space<vmem>>, vector<16x8xf32>,
    %c0_196 = arith.constant 0 : index
    %c0_197 = arith.constant 0 : index
    %264 = vector.load %arg20[%c0_196, %c0_197] : memref<16x64xf32, #tpu.memory_space<vmem>>, vector<16x64xf32>
    %c0_198 = arith.constant 0 : index
    %c0_199 = arith.constant 0 : index
    %265 = vector.load %arg10[%c0_198, %c0_199] : memref<64x64xf32, #tpu.memory_space<vmem>>, vector<64x64xf32>
    %cst_200 = arith.constant dense<0.000000e+00> : vector<16x64xf32>
    %266 = tpu.matmul %264, %265, %cst_200 {dimension_numbers = #tpu.dot_dimension_numbers<[1], [0], [0], [1], [0, 0, 1, 1], [], []>} : vector<16x64xf32>, vector<64x64xf32>, vector<16x64xf32> -> vector<16x64xf32>
    %c0_201 = arith.constant 0 : index
    %c0_202 = arith.constant 0 : index
    %267 = vector.load %arg11[%c0_201, %c0_202] : memref<1x64xf32, #tpu.memory_space<vmem>>, vector<1x64xf32>
    %268 = vector.broadcast %267 : vector<1x64xf32> to vector<16x64xf32>
    %269 = arith.addf %266, %268 : vector<16x64xf32>
    %cst_203 = arith.constant 0.000000e+00 : f32
    %270 = vector.broadcast %cst_203 : f32 to vector<16x64xf32>
    %271 = arith.maximumf %269, %270 : vector<16x64xf32>
    %c0_204 = arith.constant 0 : index
    %c0_205 = arith.constant 0 : index
    %272 = vector.load %arg12[%c0_204, %c0_205] : memref<1x64xf32, #tpu.memory_space<vmem>>, vector<1x64xf32>
    %273 = vector.broadcast %272 : vector<1x64xf32> to vector<16x64xf32>
    %274 = arith.mulf %271, %273 : vector<16x64xf32>
    %c0_206 = arith.constant 0 : index
    %c0_207 = arith.constant 0 : index
    %275 = vector.load %arg13[%c0_206, %c0_207] : memref<1x64xf32, #tpu.memory_space<vmem>>, vector<1x64xf32>
    %276 = vector.broadcast %275 : vector<1x64xf32> to vector<16x64xf32>
    %277 = arith.addf %274, %276 : vector<16x64xf32>
    %cst_208 = arith.constant dense<0.000000e+00> : vector<64xf32>
    %278 = vector.multi_reduction <add>, %277, %cst_208 [0] : vector<16x64xf32> to vector<64xf32>
    %279 = vector.shape_cast %278 : vector<64xf32> to vector<1x64xf32>
    %cst_209 = arith.constant 1.600000e+01 : f32
    %280 = vector.broadcast %cst_209 : f32 to vector<1x64xf32>
    %281 = arith.divf %279, %280 : vector<1x64xf32>
    %c0_210 = arith.constant 0 : index
    %c0_211 = arith.constant 0 : index
    %282 = vector.load %arg14[%c0_210, %c0_211] : memref<64x128xf32, #tpu.memory_space<vmem>>, vector<64x128xf32>
    %cst_212 = arith.constant dense<0.000000e+00> : vector<1x128xf32>
    %283 = tpu.matmul %281, %282, %cst_212 {dimension_numbers = #tpu.dot_dimension_numbers<[1], [0], [0], [1], [0, 0, 1, 1], [], []>} : vector<1x64xf32>, vector<64x128xf32>, vector<1x128xf32> -> vector<1x128xf32>
    %c0_213 = arith.constant 0 : index
    %c0_214 = arith.constant 0 : index
    %284 = vector.load %arg15[%c0_213, %c0_214] : memref<1x128xf32, #tpu.memory_space<vmem>>, vector<1x128xf32>
    %285 = arith.addf %283, %284 : vector<1x128xf32>
    %cst_215 = arith.constant 0.000000e+00 : f32
    %286 = vector.broadcast %cst_215 : f32 to vector<1x128xf32>
    %287 = arith.maximumf %285, %286 : vector<1x128xf32>
    %c0_216 = arith.constant 0 : index
    %c0_217 = arith.constant 0 : index
    %288 = vector.load %arg16[%c0_216, %c0_217] : memref<128x64xf32, #tpu.memory_space<vmem>>, vector<128x64xf32>
    %cst_218 = arith.constant dense<0.000000e+00> : vector<1x64xf32>
    %289 = tpu.matmul %287, %288, %cst_218 {dimension_numbers = #tpu.dot_dimension_numbers<[1], [0], [0], [1], [0, 0, 1, 1], [], []>} : vector<1x128xf32>, vector<128x64xf32>, vector<1x64xf32> -> vector<1x64xf32>
    %c0_219 = arith.constant 0 : index
    %c0_220 = arith.constant 0 : index
    %290 = vector.load %arg17[%c0_219, %c0_220] : memref<1x64xf32, #tpu.memory_space<vmem>>, vector<1x64xf32>
    %291 = arith.addf %289, %290 : vector<1x64xf32>
    %292 = arith.negf %291 : vector<1x64xf32>
    %293 = math.exp %292 : vector<1x64xf32>
    %cst_221 = arith.constant 1.000000e+00 : f32
    %294 = vector.broadcast %cst_221 : f32 to vector<1x64xf32>
    %295 = arith.addf %294, %293 : vector<1x64xf32>
    %296 = arith.divf %294, %295 : vector<1x64xf32>
    %297 = vector.broadcast %296 : vector<1x64xf32> to vector<16x64xf32>
    %298 = arith.mulf %277, %297 : vector<16x64xf32>
    %299 = arith.addf %298, %1 : vector<16x64xf32>
    %c0_222 = arith.constant 0 : index
    %c0_223 = arith.constant 0 : index
    %c0_224 = arith.constant 0 : index
    %300 = vector.load %arg18[%c0_222, %c0_223, %c0_224] : memref<1x16x64xf32, #tpu.memory_space<vmem>>, vector<1x16x64xf32>
    %301 = vector.shape_cast %300 : vector<1x16x64xf32> to vector<16x64xf32>
    %302 = vector.shape_cast %299 : vector<16x64xf32> to vector<1x16x64xf32>
    tpu.vector_store %arg18[%c0_222, %c0_223, %c0_224], %302 {strides = array<i32>} : memref<1x16x64xf32, #tpu.memory_space<vmem>>, vector<1x16x64xf32>,
    return
  }
  func.func @transform_0(%arg0: i32) -> (i32, i32, i32) {
    %c0_i32 = arith.constant 0 : i32
    %c0_i32_0 = arith.constant 0 : i32
    %c0_i32_1 = arith.constant 0 : i32
    return %arg0, %c0_i32, %c0_i32_0 : i32, i32, i32
  }
  func.func @transform_1(%arg0: i32) -> (i32, i32) {
    %c0_i32 = arith.constant 0 : i32
    %c0_i32_0 = arith.constant 0 : i32
    %c0_i32_1 = arith.constant 0 : i32
    return %c0_i32, %c0_i32_0 : i32, i32
  }
  func.func @transform_2(%arg0: i32) -> (i32, i32) {
    %c0_i32 = arith.constant 0 : i32
    %c0_i32_0 = arith.constant 0 : i32
    %c0_i32_1 = arith.constant 0 : i32
    return %c0_i32, %c0_i32_0 : i32, i32
  }
  func.func @transform_3(%arg0: i32) -> (i32, i32) {
    %c0_i32 = arith.constant 0 : i32
    %c0_i32_0 = arith.constant 0 : i32
    %c0_i32_1 = arith.constant 0 : i32
    return %c0_i32, %c0_i32_0 : i32, i32
  }
  func.func @transform_4(%arg0: i32) -> (i32, i32) {
    %c0_i32 = arith.constant 0 : i32
    %c0_i32_0 = arith.constant 0 : i32
    %c0_i32_1 = arith.constant 0 : i32
    return %c0_i32, %c0_i32_0 : i32, i32
  }
  func.func @transform_5(%arg0: i32) -> (i32, i32, i32) {
    %c0_i32 = arith.constant 0 : i32
    %c0_i32_0 = arith.constant 0 : i32
    %c0_i32_1 = arith.constant 0 : i32
    %c0_i32_2 = arith.constant 0 : i32
    return %c0_i32, %c0_i32_0, %c0_i32_1 : i32, i32, i32
  }
  func.func @transform_6(%arg0: i32) -> (i32, i32) {
    %c0_i32 = arith.constant 0 : i32
    %c0_i32_0 = arith.constant 0 : i32
    %c0_i32_1 = arith.constant 0 : i32
    return %c0_i32, %c0_i32_0 : i32, i32
  }
  func.func @transform_7(%arg0: i32) -> (i32, i32) {
    %c0_i32 = arith.constant 0 : i32
    %c0_i32_0 = arith.constant 0 : i32
    %c0_i32_1 = arith.constant 0 : i32
    return %c0_i32, %c0_i32_0 : i32, i32
  }
  func.func @transform_8(%arg0: i32) -> (i32, i32) {
    %c0_i32 = arith.constant 0 : i32
    %c0_i32_0 = arith.constant 0 : i32
    %c0_i32_1 = arith.constant 0 : i32
    return %c0_i32, %c0_i32_0 : i32, i32
  }
  func.func @transform_9(%arg0: i32) -> (i32, i32) {
    %c0_i32 = arith.constant 0 : i32
    %c0_i32_0 = arith.constant 0 : i32
    %c0_i32_1 = arith.constant 0 : i32
    return %c0_i32, %c0_i32_0 : i32, i32
  }
  func.func @transform_10(%arg0: i32) -> (i32, i32) {
    %c0_i32 = arith.constant 0 : i32
    %c0_i32_0 = arith.constant 0 : i32
    %c0_i32_1 = arith.constant 0 : i32
    return %c0_i32, %c0_i32_0 : i32, i32
  }
  func.func @transform_11(%arg0: i32) -> (i32, i32) {
    %c0_i32 = arith.constant 0 : i32
    %c0_i32_0 = arith.constant 0 : i32
    %c0_i32_1 = arith.constant 0 : i32
    return %c0_i32, %c0_i32_0 : i32, i32
  }
  func.func @transform_12(%arg0: i32) -> (i32, i32) {
    %c0_i32 = arith.constant 0 : i32
    %c0_i32_0 = arith.constant 0 : i32
    %c0_i32_1 = arith.constant 0 : i32
    return %c0_i32, %c0_i32_0 : i32, i32
  }
  func.func @transform_13(%arg0: i32) -> (i32, i32) {
    %c0_i32 = arith.constant 0 : i32
    %c0_i32_0 = arith.constant 0 : i32
    %c0_i32_1 = arith.constant 0 : i32
    return %c0_i32, %c0_i32_0 : i32, i32
  }
  func.func @transform_14(%arg0: i32) -> (i32, i32) {
    %c0_i32 = arith.constant 0 : i32
    %c0_i32_0 = arith.constant 0 : i32
    %c0_i32_1 = arith.constant 0 : i32
    return %c0_i32, %c0_i32_0 : i32, i32
  }
  func.func @transform_15(%arg0: i32) -> (i32, i32) {
    %c0_i32 = arith.constant 0 : i32
    %c0_i32_0 = arith.constant 0 : i32
    %c0_i32_1 = arith.constant 0 : i32
    return %c0_i32, %c0_i32_0 : i32, i32
  }
  func.func @transform_16(%arg0: i32) -> (i32, i32) {
    %c0_i32 = arith.constant 0 : i32
    %c0_i32_0 = arith.constant 0 : i32
    %c0_i32_1 = arith.constant 0 : i32
    return %c0_i32, %c0_i32_0 : i32, i32
  }
  func.func @transform_17(%arg0: i32) -> (i32, i32, i32) {
    %c0_i32 = arith.constant 0 : i32
    %c0_i32_0 = arith.constant 0 : i32
    %c0_i32_1 = arith.constant 0 : i32
    return %arg0, %c0_i32, %c0_i32_0 : i32, i32, i32
  }
}

</mosaic_0001>

<bundles_post_ra>
// kernel: tpu_custom_call.1
= control target key start
LH: loop header
LB: loop body
LE: loop exit
PB: predicated region body
PF: predicated region fallthrough
CT: control target
= control target key end

     0   :  { %s5690_s0 = inlined_call_operand.hbm [shape: f32[2,16,64], index: 0, kind: input, shape index: {}]   ;;  %s5691_s1 = inlined_call_operand.hbm [shape: f32[64,64], index: 1, kind: input, shape index: {}]   ;;  %s5692_s2 = inlined_call_operand.hbm [shape: f32[1,64], index: 2, kind: input, shape index: {}]   ;;  %s5693_s3 = inlined_call_operand.hbm [shape: f32[1,64], index: 3, kind: input, shape index: {}]   ;;  %s5694_s4 = inlined_call_operand.hbm [shape: f32[1,64], index: 4, kind: input, shape index: {}]   ;;  %s5695_s5 = inlined_call_operand.hbm [shape: f32[21,8,8], index: 5, kind: input, shape index: {}]   ;;  %s5696_s6 = inlined_call_operand.hbm [shape: f32[7,8], index: 6, kind: input, shape index: {}]   ;;  %s5697_s7 = inlined_call_operand.hbm [shape: f32[7,8], index: 7, kind: input, shape index: {}]   ;;  %s5698_s8 = inlined_call_operand.hbm [shape: f32[7,8], index: 8, kind: input, shape index: {}]   ;;  %s5699_s9 = inlined_call_operand.hbm [shape: f32[64,64], index: 9, kind: input, shape index: {}]   ;;  %s5700_s10 = inlined_call_operand.hbm [shape: f32[1,64], index: 10, kind: input, shape index: {}]   ;;  %s5701_s11 = inlined_call_operand.hbm [shape: f32[1,64], index: 11, kind: input, shape index: {}]   ;;  %s5702_s12 = inlined_call_operand.hbm [shape: f32[1,64], index: 12, kind: input, shape index: {}]   ;;  %s5703_s13 = inlined_call_operand.hbm [shape: f32[64,128], index: 13, kind: input, shape index: {}]   ;;  %s5704_s14 = inlined_call_operand.hbm [shape: f32[1,128], index: 14, kind: input, shape index: {}]   ;;  %s5705_s15 = inlined_call_operand.hbm [shape: f32[128,64], index: 15, kind: input, shape index: {}]   ;;  %s5706_s16 = inlined_call_operand.hbm [shape: f32[1,64], index: 16, kind: input, shape index: {}]   ;;  %s5707_s17 = inlined_call_operand.hbm [shape: f32[2,16,64], index: 17, kind: output, shape index: {}]  }
   0x1   :  { %5725 = sst [smem:[#allocation48_spill]] %s5690_s0 }
   0x2   :  { %5726 = sst [smem:[#allocation49_spill]] %s5691_s1 }
   0x3   :  { %5727 = sst [smem:[#allocation50_spill]] %s5692_s2 }
   0x4   :  { %5728 = sst [smem:[#allocation51_spill]] %s5693_s3 }
   0x5   :  { %5729 = sst [smem:[#allocation52_spill]] %s5694_s4 }
   0x6   :  { %5730 = sst [smem:[#allocation53_spill]] %s5706_s16 }
   0x7   :  { %5731 = sst [smem:[#allocation54_spill]] %s5707_s17 }
   0x8   :  { %22 = vsyncpa [#allocation5], 0 }
   0x9   :  { %24 = vsyncpa [#allocation5 + $0x1], 0 }
   0xa   :  { %25 = vsyncpa [#allocation8], 0 }
   0xb   :  { %26 = vsyncpa [#allocation11], 0 }
   0xc   :  { %27 = vsyncpa [#allocation14], 0 }
   0xd   :  { %28 = vsyncpa [#allocation17], 0 }
   0xe   :  { %29 = vsyncpa [#allocation20], 0 }
   0xf   :  { %30 = vsyncpa [#allocation23], 0 }
  0x10   :  { %31 = vsyncpa [#allocation26], 0 }
  0x11   :  { %32 = vsyncpa [#allocation29], 0 }
  0x12   :  { %33 = vsyncpa [#allocation6], 0 }
  0x13   :  { %35 = vsyncpa [#allocation6 + $0x1], 0  ;;  %s5021_s24 = smov 0   ;;  %s5023_s25 = smov 0  }
  0x14   :  { %s5025_s26 = smov 0   ;;  %s5027_s27 = smov 0  }
  0x15 LB: > { %5732 = sst [smem:[#allocation42_spill]] %s4881_s24  ;;  %s4895_s28 = smov [#allocation7]   ;;  %s4893_s27 = sphi %s5027_s27, %s5393_s27   ;;  %s4889_s26 = sphi %s5025_s26, %s5790_s26   ;;  %s4885_s25 = sphi %s5023_s25, %s5789_s25   ;;  %s4881_s24 = sphi %s5021_s24, %s5788_s24  }
  0x16   : > { %5733 = sst [smem:[#allocation43_spill]] %s4885_s25  ;;  %s446_s29 = sshll.u32 %s4895_s28, 4  ;;  %s5047_s29 = int_to_ptr.vmem [resolvable:$true] %s446_s29 }
  0x17   : > { %5734 = sst [smem:[#allocation44_spill]] %s4889_s26  ;;  %s5042_s0 = sadd.s32 4294967295, %s4893_s27  }
  0x18   : > { %5735 = sst [smem:[#allocation45_spill]] %s4893_s27  ;;  %p3549_p0 = scmp.ge.s32.totalorder %s4893_s27, 1 }
  0x19   : > { %5736 = sst [smem:[#allocation46_spill]] %s5042_s0  ;;  %p5720_p1 = scmp.eq.s32.totalorder %s5042_s0, 0 }
  0x1a   : > { %p434_p2 = scmp.lt.s32.totalorder %s4893_s27, 3  ;;  %s4896_s18 = smov [#allocation10]  }
  0x1b   : > { %s471_s19 = sshll.u32 %s4896_s18, 4  ;;  %s4897_s20 = smov [#allocation13]   ;;  %s5062_s19 = int_to_ptr.vmem [resolvable:$true] %s471_s19 }
  0x1c   : > { %p5049_p3 = pnand %p3549_p0, %p434_p2  ;;  %s492_s21 = sshll.u32 %s4897_s20, 4  ;;  %s5064_s21 = int_to_ptr.vmem [resolvable:$true] %s492_s21 }
  0x1d   : > { %s5740_s28 = sld [smem:[#allocation49_spill]] }
  0x1e   : > { %s5737_s30 = scalar_select %p5049_p3, 1, 0 }
  0x1f   : > { %p4155_p5 = pneg %p5049_p3 }
  0x20   : > { %5738 = sst [smem:[#allocation47_spill]] %s5737_s30 }
  0x21   : > { %p5058_p6 = pnand %p4155_p5, %p5720_p1 }
  0x23   : > { %s4317_s17 = scalar_lea.hbm %s5740_s28, 1024  ;;  %p5074_p8 = pneg %p5058_p6 }
  0x24   : > { %p4318_p7 = scmp.ne.s32.totalorder %s5740_s28, %s4317_s17  ;;  %p4324_p11 = scmp.lt.u32.totalorder %s4317_s17, %s5740_s28 }
  0x26   : > { %p4320_p9 = pnand %p5074_p8, %p4318_p7 }
  0x28   : > { %p4321_p10 = pneg %p4320_p9 }
  0x2a   : > { %p4326_p12 = pnand %p4324_p11, %p4321_p10 }
  0x2c   : > { %4329 = shalt.err (!%p4326_p12)
}
  0x2d   : > { %s4330_s24 = scalar_lea.vmem %s5047_s29, 1024  ;;  %p4338_p5 = scmp.lt.s32.totalorder %s5047_s29, %s5047_s29 }
  0x2e   : > { %p4331_p13 = scmp.ne.s32.totalorder %s5047_s29, %s4330_s24  ;;  %p4339_p4 = scmp.lt.s32.totalorder %s4330_s24, %s4330_s24 }
  0x30   : > { %p4333_p0 = pnand %p4331_p13, %p5074_p8  ;;  %p4340_p7 = por %p4339_p4, %p4338_p5 }
  0x32   : > { %p4334_p2 = pneg %p4333_p0 }
  0x34   : > { %p4341_p9 = pnand %p4340_p7, %p4334_p2 }
  0x36   : > { %4344 = shalt.err (!%p4341_p9)
}
  0x37   : > { %s5722_s30 = smov 128   ;;  %s5723_s17 = smov 8  }
  0x38   : > { %4158 = dma.hbm_to_vmem [thread:$0]  (!%p5058_p6), %s5740_s28, 1024, %s5047_s29, [#allocation8], %s5722_s30, %s5722_s30, %s5723_s17  }
  0x39   : > { %s5742_s3 = sld [smem:[#allocation51_spill]] }
  0x3f   : > { %s4345_s24 = scalar_lea.hbm %s5742_s3, 16 }
  0x40   : > { %p4346_p4 = scmp.ne.s32.totalorder %s5742_s3, %s4345_s24  ;;  %p4352_p12 = scmp.lt.u32.totalorder %s4345_s24, %s5742_s3 }
  0x42   : > { %p4348_p10 = pnand %p4346_p4, %p5074_p8 }
  0x44   : > { %p4349_p11 = pneg %p4348_p10 }
  0x46   : > { %p4354_p13 = pnand %p4352_p12, %p4349_p11 }
  0x48   : > { %4357 = shalt.err (!%p4354_p13)
}
  0x49   : > { %s4358_s29 = scalar_lea.vmem %s5062_s19, 16  ;;  %s4365_s25 = scalar_lea.vmem %s5062_s19, 32 }
  0x4a   : > { %p4359_p0 = scmp.ne.s32.totalorder %s5062_s19, %s4358_s29  ;;  %p4366_p7 = scmp.lt.s32.totalorder %s5062_s19, %s5062_s19 }
  0x4b   : > { %p4367_p9 = scmp.lt.s32.totalorder %s4365_s25, %s4358_s29 }
  0x4c   : > { %p4361_p2 = pnand %p4359_p0, %p5074_p8 }
  0x4d   : > { %p4368_p4 = por %p4367_p9, %p4366_p7 }
  0x4e   : > { %p4362_p5 = pneg %p4361_p2 }
  0x50   : > { %p4369_p10 = pnand %p4368_p4, %p4362_p5 }
  0x52   : > { %4372 = shalt.err (!%p4369_p10)
}
  0x53   : > { %4164 = dma.hbm_to_vmem [thread:$0]  (!%p5058_p6), %s5742_s3, 16, %s5062_s19, [#allocation11]  }
  0x54   : > { %s4373_s22 = scalar_lea.hbm %s5695_s5, 2688 }
  0x55   : > { %p4374_p11 = scmp.ne.s32.totalorder %s5695_s5, %s4373_s22  ;;  %p4380_p0 = scmp.lt.u32.totalorder %s4373_s22, %s5695_s5 }
  0x57   : > { %p4376_p12 = pnand %p4374_p11, %p5074_p8 }
  0x59   : > { %p4377_p13 = pneg %p4376_p12 }
  0x5b   : > { %p4382_p2 = pnand %p4380_p0, %p4377_p13 }
  0x5d   : > { %4385 = shalt.err (!%p4382_p2)
}
  0x5e   : > { %s4386_s19 = scalar_lea.vmem %s5064_s21, 2688  ;;  %p4394_p4 = scmp.lt.s32.totalorder %s5064_s21, %s5064_s21 }
  0x5f   : > { %p4387_p5 = scmp.ne.s32.totalorder %s5064_s21, %s4386_s19  ;;  %p4395_p10 = scmp.lt.s32.totalorder %s4386_s19, %s4386_s19 }
  0x61   : > { %p4389_p7 = pnand %p4387_p5, %p5074_p8  ;;  %p4396_p11 = por %p4395_p10, %p4394_p4 }
  0x63   : > { %p4390_p9 = pneg %p4389_p7 }
  0x65   : > { %p4397_p12 = pnand %p4396_p11, %p4390_p9 }
  0x67   : > { %4400 = shalt.err (!%p4397_p12)
}
  0x68   : > { %4170 = dma.hbm_to_vmem [thread:$0]  (!%p5058_p6), %s5695_s5, 2688, %s5064_s21, [#allocation14], %s5722_s30, %s5722_s30, %s5723_s17  }
  0x69   : > { %s4900_s26 = smov [#allocation16]   ;;  %s4901_s0 = smov [#allocation19]  }
  0x6a   : > { %s517_s27 = sshll.u32 %s4900_s26, 4  ;;  %s538_s22 = sshll.u32 %s4901_s0, 4  ;;  %s518_s27 = int_to_ptr.vmem [resolvable:$true] %s517_s27  ;;  %s539_s22 = int_to_ptr.vmem [resolvable:$true] %s538_s22 }
  0x6b   : > { %s4401_s24 = scalar_lea.hbm %s5697_s7, 128 }
  0x6c   : > { %p4402_p13 = scmp.ne.s32.totalorder %s5697_s7, %s4401_s24  ;;  %p4408_p5 = scmp.lt.u32.totalorder %s4401_s24, %s5697_s7 }
  0x6e   : > { %p4404_p0 = pnand %p4402_p13, %p5074_p8 }
  0x70   : > { %p4405_p2 = pneg %p4404_p0 }
  0x72   : > { %p4410_p7 = pnand %p4408_p5, %p4405_p2 }
  0x74   : > { %4413 = shalt.err (!%p4410_p7)
}
  0x75   : > { %s4414_s21 = scalar_lea.vmem %s518_s27, 128  ;;  %p4422_p11 = scmp.lt.s32.totalorder %s518_s27, %s518_s27 }
  0x76   : > { %p4415_p9 = scmp.ne.s32.totalorder %s518_s27, %s4414_s21  ;;  %p4423_p12 = scmp.lt.s32.totalorder %s4414_s21, %s4414_s21 }
  0x78   : > { %p4417_p4 = pnand %p4415_p9, %p5074_p8  ;;  %p4424_p1 = por %p4423_p12, %p4422_p11 }
  0x7a   : > { %p4418_p10 = pneg %p4417_p4 }
  0x7c   : > { %p4425_p3 = pnand %p4424_p1, %p4418_p10 }
  0x7e   : > { %4428 = shalt.err (!%p4425_p3)
}
  0x7f   : > { %4176 = dma.hbm_to_vmem [thread:$0]  (!%p5058_p6), %s5697_s7, 128, %s518_s27, [#allocation17]  }
  0x80   : > { %s4429_s23 = scalar_lea.hbm %s5699_s9, 1024 }
  0x81   : > { %p4430_p13 = scmp.ne.s32.totalorder %s5699_s9, %s4429_s23  ;;  %p4436_p3 = scmp.lt.u32.totalorder %s4429_s23, %s5699_s9 }
  0x83   : > { %p4432_p0 = pnand %p4430_p13, %p5074_p8 }
  0x85   : > { %p4433_p1 = pneg %p4432_p0 }
  0x87   : > { %p4438_p2 = pnand %p4436_p3, %p4433_p1 }
  0x89   : > { %4441 = shalt.err (!%p4438_p2)
}
  0x8a   : > { %s4442_s25 = scalar_lea.vmem %s539_s22, 1024  ;;  %p4450_p4 = scmp.lt.s32.totalorder %s539_s22, %s539_s22 }
  0x8b   : > { %p4443_p5 = scmp.ne.s32.totalorder %s539_s22, %s4442_s25  ;;  %p4451_p10 = scmp.lt.s32.totalorder %s4442_s25, %s4442_s25 }
  0x8d   : > { %p4445_p7 = pnand %p4443_p5, %p5074_p8  ;;  %p4452_p11 = por %p4451_p10, %p4450_p4 }
  0x8f   : > { %p4446_p9 = pneg %p4445_p7 }
  0x91   : > { %p4453_p12 = pnand %p4452_p11, %p4446_p9 }
  0x93   : > { %4456 = shalt.err (!%p4453_p12)
}
  0x94   : > { %4182 = dma.hbm_to_vmem [thread:$0]  (!%p5058_p6), %s5699_s9, 1024, %s539_s22, [#allocation20], %s5722_s30, %s5722_s30, %s5723_s17  }
  0x95   : > { %s4902_s16 = smov [#allocation22]   ;;  %s4903_s3 = smov [#allocation25]  }
  0x96   : > { %s563_s26 = sshll.u32 %s4902_s16, 4  ;;  %s584_s0 = sshll.u32 %s4903_s3, 4  ;;  %s564_s26 = int_to_ptr.vmem [resolvable:$true] %s563_s26  ;;  %s585_s0 = int_to_ptr.vmem [resolvable:$true] %s584_s0 }
  0x97   : > { %s4457_s24 = scalar_lea.hbm %s5701_s11, 16 }
  0x98   : > { %p4458_p13 = scmp.ne.s32.totalorder %s5701_s11, %s4457_s24  ;;  %p4464_p3 = scmp.lt.u32.totalorder %s4457_s24, %s5701_s11 }
  0x9a   : > { %p4460_p0 = pnand %p4458_p13, %p5074_p8 }
  0x9c   : > { %p4461_p1 = pneg %p4460_p0 }
  0x9e   : > { %p4466_p2 = pnand %p4464_p3, %p4461_p1 }
  0xa0   : > { %4469 = shalt.err (!%p4466_p2)
}
  0xa1   : > { %s4470_s22 = scalar_lea.vmem %s564_s26, 16  ;;  %s4477_s21 = scalar_lea.vmem %s564_s26, 32 }
  0xa2   : > { %p4471_p5 = scmp.ne.s32.totalorder %s564_s26, %s4470_s22  ;;  %p4478_p4 = scmp.lt.s32.totalorder %s564_s26, %s564_s26 }
  0xa3   : > { %p4479_p10 = scmp.lt.s32.totalorder %s4477_s21, %s4470_s22 }
  0xa4   : > { %p4473_p7 = pnand %p4471_p5, %p5074_p8 }
  0xa5   : > { %p4480_p11 = por %p4479_p10, %p4478_p4 }
  0xa6   : > { %p4474_p9 = pneg %p4473_p7 }
  0xa8   : > { %p4481_p12 = pnand %p4480_p11, %p4474_p9 }
  0xaa   : > { %4484 = shalt.err (!%p4481_p12)
}
  0xab   : > { %4188 = dma.hbm_to_vmem [thread:$0]  (!%p5058_p6), %s5701_s11, 16, %s564_s26, [#allocation23]  }
  0xac   : > { %s4485_s24 = scalar_lea.hbm %s5703_s13, 1024 }
  0xad   : > { %p4486_p13 = scmp.ne.s32.totalorder %s5703_s13, %s4485_s24  ;;  %p4492_p3 = scmp.lt.u32.totalorder %s4485_s24, %s5703_s13 }
  0xaf   : > { %p4488_p0 = pnand %p4486_p13, %p5074_p8 }
  0xb1   : > { %p4489_p1 = pneg %p4488_p0 }
  0xb3   : > { %p4494_p2 = pnand %p4492_p3, %p4489_p1 }
  0xb5   : > { %4497 = shalt.err (!%p4494_p2)
}
  0xb6   : > { %s4498_s22 = scalar_lea.vmem %s585_s0, 1024  ;;  %p4506_p4 = scmp.lt.s32.totalorder %s585_s0, %s585_s0 }
  0xb7   : > { %p4499_p5 = scmp.ne.s32.totalorder %s585_s0, %s4498_s22  ;;  %p4507_p10 = scmp.lt.s32.totalorder %s4498_s22, %s4498_s22 }
  0xb9   : > { %p4501_p7 = pnand %p4499_p5, %p5074_p8  ;;  %p4508_p11 = por %p4507_p10, %p4506_p4 }
  0xbb   : > { %p4502_p9 = pneg %p4501_p7 }
  0xbd   : > { %p4509_p12 = pnand %p4508_p11, %p4502_p9 }
  0xbf   : > { %4512 = shalt.err (!%p4509_p12)
}
  0xc0   : > { %4194 = dma.hbm_to_vmem [thread:$0]  (!%p5058_p6), %s5703_s13, 1024, %s585_s0, [#allocation26], %s5722_s30, %s5722_s30, %s5723_s17  }
  0xc1   : > { %s4904_s16 = smov [#allocation28]   ;;  %s4905_s23 = smov [#allocation9]  }
  0xc2   : > { %s608_s3 = sshll.u32 %s4904_s16, 4  ;;  %s460_s20 = sshll.u32 %s4905_s23, 4  ;;  %s609_s3 = int_to_ptr.vmem [resolvable:$true] %s608_s3  ;;  %s461_s20 = int_to_ptr.vmem [resolvable:$true] %s460_s20 }
  0xc3   : > { %s4513_s19 = scalar_lea.hbm %s5705_s15, 2048 }
  0xc4   : > { %p4514_p13 = scmp.ne.s32.totalorder %s5705_s15, %s4513_s19  ;;  %p4520_p3 = scmp.lt.u32.totalorder %s4513_s19, %s5705_s15 }
  0xc6   : > { %p4516_p0 = pnand %p4514_p13, %p5074_p8 }
  0xc8   : > { %p4517_p1 = pneg %p4516_p0 }
  0xca   : > { %p4522_p2 = pnand %p4520_p3, %p4517_p1 }
  0xcc   : > { %4525 = shalt.err (!%p4522_p2)
}
  0xcd   : > { %s4526_s0 = scalar_lea.vmem %s609_s3, 2048  ;;  %p4534_p4 = scmp.lt.s32.totalorder %s609_s3, %s609_s3 }
  0xce   : > { %p4527_p5 = scmp.ne.s32.totalorder %s609_s3, %s4526_s0  ;;  %p4535_p10 = scmp.lt.s32.totalorder %s4526_s0, %s4526_s0 }
  0xd0   : > { %p4529_p7 = pnand %p4527_p5, %p5074_p8  ;;  %p4536_p11 = por %p4535_p10, %p4534_p4 }
  0xd2   : > { %p4530_p9 = pneg %p4529_p7 }
  0xd4   : > { %p4537_p12 = pnand %p4536_p11, %p4530_p9 }
  0xd6   : > { %4540 = shalt.err (!%p4537_p12)
}
  0xd7   : > { %4200 = dma.hbm_to_vmem [thread:$0]  (!%p5058_p6), %s5705_s15, 2048, %s609_s3, [#allocation29], %s5722_s30, %s5722_s30, %s5723_s17  }
  0xd8   : > { %s5743_s2 = sld [smem:[#allocation50_spill]] }
  0xde   : > { %s4541_s29 = scalar_lea.hbm %s5743_s2, 16 }
  0xdf   : > { %p4542_p13 = scmp.ne.s32.totalorder %s5743_s2, %s4541_s29  ;;  %p4548_p3 = scmp.lt.u32.totalorder %s4541_s29, %s5743_s2 }
  0xe1   : > { %p4544_p0 = pnand %p4542_p13, %p5074_p8 }
  0xe3   : > { %p4545_p1 = pneg %p4544_p0 }
  0xe5   : > { %p4550_p2 = pnand %p4548_p3, %p4545_p1 }
  0xe7   : > { %4553 = shalt.err (!%p4550_p2)
}
  0xe8   : > { %s4554_s26 = scalar_lea.vmem %s461_s20, 16  ;;  %s4561_s3 = scalar_lea.vmem %s461_s20, 32 }
  0xe9   : > { %p4555_p5 = scmp.ne.s32.totalorder %s461_s20, %s4554_s26  ;;  %p4562_p4 = scmp.lt.s32.totalorder %s461_s20, %s461_s20 }
  0xea   : > { %p4563_p10 = scmp.lt.s32.totalorder %s4561_s3, %s4554_s26 }
  0xeb   : > { %p4557_p7 = pnand %p4555_p5, %p5074_p8 }
  0xec   : > { %p4564_p11 = por %p4563_p10, %p4562_p4 }
  0xed   : > { %p4558_p9 = pneg %p4557_p7 }
  0xef   : > { %p4565_p12 = pnand %p4564_p11, %p4558_p9 }
  0xf1   : > { %4568 = shalt.err (!%p4565_p12)
}
  0xf2   : > { %4161 = dma.hbm_to_vmem [thread:$0]  (!%p5058_p6), %s5743_s2, 16, %s461_s20, [#allocation8]  }
  0xf3   : > { %s4906_s16 = smov [#allocation12]   ;;  %s4907_s24 = smov [#allocation15]  }
  0xf4   : > { %s482_s23 = sshll.u32 %s4906_s16, 4  ;;  %s506_s29 = sshll.u32 %s4907_s24, 4  ;;  %s483_s23 = int_to_ptr.vmem [resolvable:$true] %s482_s23  ;;  %s507_s29 = int_to_ptr.vmem [resolvable:$true] %s506_s29 }
  0xf5   : > { %s5744_s4 = sld [smem:[#allocation52_spill]] }
  0xfb   : > { %s4569_s27 = scalar_lea.hbm %s5744_s4, 16 }
  0xfc   : > { %p4570_p13 = scmp.ne.s32.totalorder %s5744_s4, %s4569_s27  ;;  %p4576_p3 = scmp.lt.u32.totalorder %s4569_s27, %s5744_s4 }
  0xfe   : > { %p4572_p0 = pnand %p4570_p13, %p5074_p8 }
 0x100   : > { %p4573_p1 = pneg %p4572_p0 }
 0x102   : > { %p4578_p2 = pnand %p4576_p3, %p4573_p1 }
 0x104   : > { %4581 = shalt.err (!%p4578_p2)
}
 0x105   : > { %s4582_s20 = scalar_lea.vmem %s483_s23, 16  ;;  %s4589_s21 = scalar_lea.vmem %s483_s23, 32 }
 0x106   : > { %p4583_p5 = scmp.ne.s32.totalorder %s483_s23, %s4582_s20  ;;  %p4590_p4 = scmp.lt.s32.totalorder %s483_s23, %s483_s23 }
 0x107   : > { %p4591_p10 = scmp.lt.s32.totalorder %s4589_s21, %s4582_s20 }
 0x108   : > { %p4585_p7 = pnand %p4583_p5, %p5074_p8 }
 0x109   : > { %p4592_p11 = por %p4591_p10, %p4590_p4 }
 0x10a   : > { %p4586_p9 = pneg %p4585_p7 }
 0x10c   : > { %p4593_p12 = pnand %p4592_p11, %p4586_p9 }
 0x10e   : > { %4596 = shalt.err (!%p4593_p12)
}
 0x10f   : > { %4167 = dma.hbm_to_vmem [thread:$0]  (!%p5058_p6), %s5744_s4, 16, %s483_s23, [#allocation11]  }
 0x110   : > { %s4597_s27 = scalar_lea.hbm %s5696_s6, 128 }
 0x111   : > { %p4598_p13 = scmp.ne.s32.totalorder %s5696_s6, %s4597_s27  ;;  %p4604_p3 = scmp.lt.u32.totalorder %s4597_s27, %s5696_s6 }
 0x113   : > { %p4600_p0 = pnand %p4598_p13, %p5074_p8 }
 0x115   : > { %p4601_p1 = pneg %p4600_p0 }
 0x117   : > { %p4606_p2 = pnand %p4604_p3, %p4601_p1 }
 0x119   : > { %4609 = shalt.err (!%p4606_p2)
}
 0x11a   : > { %s4610_s20 = scalar_lea.vmem %s507_s29, 128  ;;  %p4618_p4 = scmp.lt.s32.totalorder %s507_s29, %s507_s29 }
 0x11b   : > { %p4611_p5 = scmp.ne.s32.totalorder %s507_s29, %s4610_s20  ;;  %p4619_p10 = scmp.lt.s32.totalorder %s4610_s20, %s4610_s20 }
 0x11d   : > { %p4613_p7 = pnand %p4611_p5, %p5074_p8  ;;  %p4620_p11 = por %p4619_p10, %p4618_p4 }
 0x11f   : > { %p4614_p9 = pneg %p4613_p7 }
 0x121   : > { %p4621_p12 = pnand %p4620_p11, %p4614_p9 }
 0x123   : > { %4624 = shalt.err (!%p4621_p12)
}
 0x124   : > { %4173 = dma.hbm_to_vmem [thread:$0]  (!%p5058_p6), %s5696_s6, 128, %s507_s29, [#allocation14]  }
 0x125   : > { %s4908_s16 = smov [#allocation18]   ;;  %s4909_s19 = smov [#allocation21]  }
 0x126   : > { %s528_s24 = sshll.u32 %s4908_s16, 4  ;;  %s552_s25 = sshll.u32 %s4909_s19, 4  ;;  %s529_s24 = int_to_ptr.vmem [resolvable:$true] %s528_s24  ;;  %s553_s25 = int_to_ptr.vmem [resolvable:$true] %s552_s25 }
 0x127   : > { %s4625_s26 = scalar_lea.hbm %s5698_s8, 128 }
 0x128   : > { %p4626_p13 = scmp.ne.s32.totalorder %s5698_s8, %s4625_s26  ;;  %p4632_p3 = scmp.lt.u32.totalorder %s4625_s26, %s5698_s8 }
 0x12a   : > { %p4628_p0 = pnand %p4626_p13, %p5074_p8 }
 0x12c   : > { %p4629_p1 = pneg %p4628_p0 }
 0x12e   : > { %p4634_p2 = pnand %p4632_p3, %p4629_p1 }
 0x130   : > { %4637 = shalt.err (!%p4634_p2)
}
 0x131   : > { %s4638_s29 = scalar_lea.vmem %s529_s24, 128  ;;  %p4646_p4 = scmp.lt.s32.totalorder %s529_s24, %s529_s24 }
 0x132   : > { %p4639_p5 = scmp.ne.s32.totalorder %s529_s24, %s4638_s29  ;;  %p4647_p10 = scmp.lt.s32.totalorder %s4638_s29, %s4638_s29 }
 0x134   : > { %p4641_p7 = pnand %p4639_p5, %p5074_p8  ;;  %p4648_p11 = por %p4647_p10, %p4646_p4 }
 0x136   : > { %p4642_p9 = pneg %p4641_p7 }
 0x138   : > { %p4649_p12 = pnand %p4648_p11, %p4642_p9 }
 0x13a   : > { %4652 = shalt.err (!%p4649_p12)
}
 0x13b   : > { %4179 = dma.hbm_to_vmem [thread:$0]  (!%p5058_p6), %s5698_s8, 128, %s529_s24, [#allocation17]  }
 0x13c   : > { %s4653_s22 = scalar_lea.hbm %s5700_s10, 16 }
 0x13d   : > { %p4654_p13 = scmp.ne.s32.totalorder %s5700_s10, %s4653_s22  ;;  %p4660_p3 = scmp.lt.u32.totalorder %s4653_s22, %s5700_s10 }
 0x13f   : > { %p4656_p0 = pnand %p4654_p13, %p5074_p8 }
 0x141   : > { %p4657_p1 = pneg %p4656_p0 }
 0x143   : > { %p4662_p2 = pnand %p4660_p3, %p4657_p1 }
 0x145   : > { %4665 = shalt.err (!%p4662_p2)
}
 0x146   : > { %s4666_s23 = scalar_lea.vmem %s553_s25, 16  ;;  %s4673_s24 = scalar_lea.vmem %s553_s25, 32 }
 0x147   : > { %p4667_p5 = scmp.ne.s32.totalorder %s553_s25, %s4666_s23  ;;  %p4674_p4 = scmp.lt.s32.totalorder %s553_s25, %s553_s25 }
 0x148   : > { %p4675_p10 = scmp.lt.s32.totalorder %s4673_s24, %s4666_s23 }
 0x149   : > { %p4669_p7 = pnand %p4667_p5, %p5074_p8 }
 0x14a   : > { %p4676_p11 = por %p4675_p10, %p4674_p4 }
 0x14b   : > { %p4670_p9 = pneg %p4669_p7 }
 0x14d   : > { %p4677_p12 = pnand %p4676_p11, %p4670_p9 }
 0x14f   : > { %4680 = shalt.err (!%p4677_p12)
}
 0x150   : > { %4185 = dma.hbm_to_vmem [thread:$0]  (!%p5058_p6), %s5700_s10, 16, %s553_s25, [#allocation20]  }
 0x151   : > { %s4910_s16 = smov [#allocation24]   ;;  %s4911_s27 = smov [#allocation27]  }
 0x152   : > { %s574_s19 = sshll.u32 %s4910_s16, 4  ;;  %s598_s22 = sshll.u32 %s4911_s27, 4  ;;  %s575_s19 = int_to_ptr.vmem [resolvable:$true] %s574_s19  ;;  %s599_s22 = int_to_ptr.vmem [resolvable:$true] %s598_s22 }
 0x153   : > { %s4681_s0 = scalar_lea.hbm %s5702_s12, 16 }
 0x154   : > { %p4682_p13 = scmp.ne.s32.totalorder %s5702_s12, %s4681_s0  ;;  %p4688_p3 = scmp.lt.u32.totalorder %s4681_s0, %s5702_s12 }
 0x156   : > { %p4684_p0 = pnand %p4682_p13, %p5074_p8 }
 0x158   : > { %p4685_p1 = pneg %p4684_p0 }
 0x15a   : > { %p4690_p2 = pnand %p4688_p3, %p4685_p1 }
 0x15c   : > { %4693 = shalt.err (!%p4690_p2)
}
 0x15d   : > { %s4694_s25 = scalar_lea.vmem %s575_s19, 16  ;;  %s4701_s21 = scalar_lea.vmem %s575_s19, 32 }
 0x15e   : > { %p4695_p5 = scmp.ne.s32.totalorder %s575_s19, %s4694_s25  ;;  %p4702_p4 = scmp.lt.s32.totalorder %s575_s19, %s575_s19 }
 0x15f   : > { %p4703_p10 = scmp.lt.s32.totalorder %s4701_s21, %s4694_s25 }
 0x160   : > { %p4697_p7 = pnand %p4695_p5, %p5074_p8 }
 0x161   : > { %p4704_p11 = por %p4703_p10, %p4702_p4 }
 0x162   : > { %p4698_p9 = pneg %p4697_p7 }
 0x164   : > { %p4705_p12 = pnand %p4704_p11, %p4698_p9 }
 0x166   : > { %4708 = shalt.err (!%p4705_p12)
}
 0x167   : > { %4191 = dma.hbm_to_vmem [thread:$0]  (!%p5058_p6), %s5702_s12, 16, %s575_s19, [#allocation23]  }
 0x168   : > { %s4709_s0 = scalar_lea.hbm %s5704_s14, 16 }
 0x169   : > { %p4710_p13 = scmp.ne.s32.totalorder %s5704_s14, %s4709_s0  ;;  %p4716_p3 = scmp.lt.u32.totalorder %s4709_s0, %s5704_s14 }
 0x16b   : > { %p4712_p0 = pnand %p4710_p13, %p5074_p8 }
 0x16d   : > { %p4713_p1 = pneg %p4712_p0 }
 0x16f   : > { %p4718_p2 = pnand %p4716_p3, %p4713_p1 }
 0x171   : > { %4721 = shalt.err (!%p4718_p2)
}
 0x172   : > { %s4722_s25 = scalar_lea.vmem %s599_s22, 16  ;;  %s4729_s19 = scalar_lea.vmem %s599_s22, 32 }
 0x173   : > { %p4723_p5 = scmp.ne.s32.totalorder %s599_s22, %s4722_s25  ;;  %p4730_p4 = scmp.lt.s32.totalorder %s599_s22, %s599_s22 }
 0x174   : > { %p4731_p10 = scmp.lt.s32.totalorder %s4729_s19, %s4722_s25 }
 0x175   : > { %p4725_p7 = pnand %p4723_p5, %p5074_p8 }
 0x176   : > { %p4732_p11 = por %p4731_p10, %p4730_p4 }
 0x177   : > { %p4726_p9 = pneg %p4725_p7 }
 0x179   : > { %p4733_p12 = pnand %p4732_p11, %p4726_p9 }
 0x17b   : > { %4736 = shalt.err (!%p4733_p12)
}
 0x17c   : > { %4197 = dma.hbm_to_vmem [thread:$0]  (!%p5058_p6), %s5704_s14, 16, %s599_s22, [#allocation26]  }
 0x17d   : > { %s4912_s27 = smov [#allocation30]   ;;  %s5745_s20 = sld [smem:[#allocation53_spill]] }
 0x17e   : > { %s622_s26 = sshll.u32 %s4912_s27, 4  ;;  %s623_s26 = int_to_ptr.vmem [resolvable:$true] %s622_s26 }
 0x183   : > { %s4737_s23 = scalar_lea.hbm %s5745_s20, 16 }
 0x184   : > { %p4738_p13 = scmp.ne.s32.totalorder %s5745_s20, %s4737_s23  ;;  %p4744_p3 = scmp.lt.u32.totalorder %s4737_s23, %s5745_s20 }
 0x186   : > { %p4740_p0 = pnand %p4738_p13, %p5074_p8 }
 0x188   : > { %p4741_p1 = pneg %p4740_p0 }
 0x18a   : > { %p4746_p2 = pnand %p4744_p3, %p4741_p1 }
 0x18c   : > { %4749 = shalt.err (!%p4746_p2)
}
 0x18d   : > { %s4750_s22 = scalar_lea.vmem %s623_s26, 16  ;;  %s4757_s21 = scalar_lea.vmem %s623_s26, 32 }
 0x18e   : > { %p4751_p5 = scmp.ne.s32.totalorder %s623_s26, %s4750_s22  ;;  %p4758_p4 = scmp.lt.s32.totalorder %s623_s26, %s623_s26 }
 0x18f   : > { %p4759_p10 = scmp.lt.s32.totalorder %s4757_s21, %s4750_s22 }
 0x190   : > { %p4753_p7 = pnand %p4751_p5, %p5074_p8 }
 0x191   : > { %p4760_p11 = por %p4759_p10, %p4758_p4 }
 0x192   : > { %p4754_p9 = pneg %p4753_p7 }
 0x194   : > { %p4761_p12 = pnand %p4760_p11, %p4754_p9 }
 0x196   : > { %4764 = shalt.err (!%p4761_p12)
}
 0x197   : > { %s5746_s3 = sld [smem:[#allocation45_spill]]  ;;  %s5747_s0 = sld [smem:[#allocation44_spill]] }
 0x198   : > { %s5748_s23 = sld [smem:[#allocation43_spill]]  ;;  %s5749_s18 = sld [smem:[#allocation42_spill]] }
 0x199   : > { %s5750_s24 = sld [smem:[#allocation46_spill]]  ;;  %s5756_s17 = sld [smem:[#allocation48_spill]] }
 0x19a   : > { %4203 = dma.hbm_to_vmem [thread:$0]  (!%p5058_p6), %s5745_s20, 16, %s623_s26, [#allocation29]  }
 0x19d   : > { %s3548_s29 = sadd.s32 4294967294, %s5746_s3   ;;  %s5393_s27 = sadd.s32 1, %s5746_s3  }
 0x19e   : > { %s45_s1 = ssub.s32 %s5746_s3, %s5393_s27  ;;  %s48_s25 = sadd.s32 1, %s5747_s0 }
 0x19f   : > { %p46_p8 = scmp.eq.s32.totalorder %s45_s1, 0  ;;  %p55_p13 = scmp.ne.s32.totalorder %s5747_s0, %s5748_s23 }
 0x1a0   : > { %p56_p0 = scmp.eq.s32.totalorder %s5746_s3, 0  ;;  %p61_p1 = scmp.ne.s32.totalorder %s5748_s23, %s5749_s18 }
 0x1a1   : > { %s5404_s19 = scalar_select %p46_p8, %s5747_s0, %s48_s25  }
 0x1a2   : > { %p5406_p3 = por %p56_p0, %p55_p13  ;;  %p5752_p2 = scmp.eq.s32.totalorder %s5750_s24, 0 }
 0x1a3   : > { %p421_p5 = scmp.eq.s32.totalorder %s5750_s24, 1  ;;  %p427_p7 = scmp.eq.s32.totalorder %s3548_s29, 1 }
 0x1a4   : > { %p5412_p6 = por %p5752_p2, %p61_p1  ;;  %p4228_p9 = scmp.lt.s32.totalorder %s5746_s3, 2 }
 0x1a5   : > { %s633_s21 = sand.u32 1, %s5747_s0   ;;  %p5419_p4 = por %p421_p5, %p55_p13 }
 0x1a6   : > { %p5423_p10 = por %p427_p7, %p61_p1  ;;  %s3567_s18 = sshll.u32 %s633_s21, 4 }
 0x1a7   : > { %s5754_s16 = scalar_select %p5419_p4, 1, 0 }
 0x1a8   : > { %s5755_s23 = scalar_select %p5423_p10, 1, 0 }
 0x1a9   : > { %s3669_s1 = sshll.u32 %s5746_s3, 8  ;;  %s637_s0 = scalar_lea.vmem [#allocation4], %s3567_s18 }
 0x1aa   : > { %s5431_s2 = scalar_lea.hbm %s5756_s17, %s3669_s1  ;;  %s644_s24 = sshll.u32 %s637_s0, 4  ;;  %s5433_s24 = int_to_ptr.vmem [resolvable:$true] %s644_s24 }
 0x1ab   : > { %p5437_p11 = pnand %p4228_p9, %p5406_p3  ;;  %s5441_s3 = scalar_lea.sflag [#allocation5], %s633_s21 }
 0x1ac   : > { %s4765_s30 = scalar_lea.hbm %s5431_s2, 256  ;;  %s4770_s22 = scalar_lea.hbm %s5756_s17, 512 }
 0x1ad   : > { %p4766_p12 = scmp.ne.s32.totalorder %s5431_s2, %s4765_s30  ;;  %p4767_p8 = pneg %p5437_p11 }
 0x1ae   : > { %p4771_p1 = scmp.lt.u32.totalorder %s5431_s2, %s5756_s17  ;;  %p4772_p3 = scmp.lt.u32.totalorder %s4770_s22, %s4765_s30 }
 0x1af   : > { %p4768_p13 = pnand %p4767_p8, %p4766_p12  ;;  %p4774_p5 = scmp.lt.u32.totalorder %s4765_s30, %s5431_s2 }
 0x1b0   : > { %p4773_p2 = por %p4772_p3, %p4771_p1 }
 0x1b1   : > { %p4769_p0 = pneg %p4768_p13 }
 0x1b2   : > { %p4775_p7 = por %p4774_p5, %p4773_p2 }
 0x1b4   : > { %p4776_p9 = pnand %p4775_p7, %p4769_p0 }
 0x1b6   : > { %4779 = shalt.err (!%p4776_p9)
}
 0x1b7   : > { %s4780_s21 = scalar_lea.vmem %s5433_s24, 256  ;;  %s4913_s18 = smov [#allocation4]  }
 0x1b8   : > { %p4781_p12 = scmp.ne.s32.totalorder %s5433_s24, %s4780_s21  ;;  %s4785_s1 = sshll.u32 %s4913_s18, 4  ;;  %s4786_s1 = int_to_ptr.vmem [resolvable:$false] %s4785_s1 }
 0x1b9   : > { %s4787_s25 = scalar_lea.vmem %s4786_s1, 512  ;;  %p4788_p4 = scmp.lt.s32.totalorder %s5433_s24, %s4786_s1 }
 0x1ba   : > { %p4783_p13 = pnand %p4781_p12, %p4767_p8  ;;  %p4789_p1 = scmp.lt.s32.totalorder %s4787_s25, %s4780_s21 }
 0x1bc   : > { %p4784_p10 = pneg %p4783_p13  ;;  %p4790_p3 = por %p4789_p1, %p4788_p4 }
 0x1be   : > { %p4791_p2 = pnand %p4790_p3, %p4784_p10 }
 0x1c0   : > { %4794 = shalt.err (!%p4791_p2)
}
 0x1c1   : > { %s5758_s30 = smov 8   ;;  %s5759_s22 = smov 128  }
 0x1c2   : > { %4207 = dma.hbm_to_vmem [thread:$0]  (!%p5437_p11), %s5431_s2, 256, %s5433_s24, %s5441_s3, %s5759_s22, %s5759_s22, %s5758_s30  }
 0x1c3   : > { %s5760_s0 = sld [smem:[#allocation47_spill]] }
 0x1c9   : > { %p5761_p8 = scmp.ne.s32.totalorder %s5760_s0, 0 }
 0x1ca   : > { %s5762_s18 = sld [smem:[#allocation43_spill]] (!%p5761_p8) }
 0x1cb   : > { %656 = sbr.rel (%p5761_p8) target bundleno = 3308 (0xcec), region = 88 }
 0x1d0   : > { %s5475_s4 = sand.u32 (!%p5761_p8), 1, %s5762_s18  }
 0x1d1   : > { %s3571_s21 = sshll.u32 (!%p5761_p8), %s5475_s4, 4  ;;  %s659_s1 = scalar_lea.sflag (!%p5761_p8), [#allocation5], %s5475_s4 }
 0x1d2   : > { %s5481_s29 = scalar_lea.vmem [#allocation4], %s3571_s21 }
 0x1d3   : > { %4840 = dma.done.wait (%p5412_p6), %s659_s1, 256  }
 0x1d4   : > { %4842 = vsyncadd (%p5412_p6), %s659_s1, 4294967040  ;;  %s5763_s2 = sld [smem:[#allocation46_spill]] }
 0x1da   : > { %p5764_p4 = scmp.eq.s32.totalorder %s5763_s2, 0 }
 0x1dc   : > { %4844 = dma.done.wait (%p5764_p4), [#allocation8], 1040   ;;  %p5765_p10 = pmov %p5764_p4 }
 0x1dd   : > { %p5766_p11 = pmov %p5764_p4 }
 0x1de   : > { %4846 = vsyncadd (%p5765_p10), [#allocation8], 4294966256 }
 0x1df   : > { %4848 = dma.done.wait (%p5766_p11), [#allocation11], 32   ;;  %p5767_p0 = pmov %p5764_p4 }
 0x1e1   : > { %4850 = vsyncadd (%p5767_p0), [#allocation11], 4294967264  ;;  %p5768_p5 = pmov %p5767_p0 }
 0x1e2   : > { %p5769_p7 = pmov %p5767_p0 }
 0x1e3   : > { %4852 = dma.done.wait (%p5768_p5), [#allocation14], 2816  }
 0x1e4   : > { %4854 = vsyncadd (%p5769_p7), [#allocation14], 4294964480  ;;  %p5770_p6 = pmov %p5767_p0 }
 0x1e5   : > { %p5771_p9 = pmov %p5767_p0 }
 0x1e6   : > { %4856 = dma.done.wait (%p5770_p6), [#allocation17], 256  }
 0x1e7   : > { %4858 = vsyncadd (%p5771_p9), [#allocation17], 4294967040  ;;  %p5772_p12 = pmov %p5767_p0 }
 0x1e8   : > { %p5773_p13 = pmov %p5767_p0 }
 0x1e9   : > { %4860 = dma.done.wait (%p5772_p12), [#allocation20], 1040  }
 0x1ea   : > { %4862 = vsyncadd (%p5773_p13), [#allocation20], 4294966256  ;;  %p5774_p1 = pmov %p5767_p0 }
 0x1eb   : > { %p5775_p3 = pmov %p5767_p0 }
 0x1ec   : > { %4864 = dma.done.wait (%p5774_p1), [#allocation23], 32  }
 0x1ed   : > { %4866 = vsyncadd (%p5775_p3), [#allocation23], 4294967264  ;;  %p5776_p2 = pmov %p5767_p0 }
 0x1ee   : > { %p5777_p8 = pmov %p5767_p0 }
 0x1ef   : > { %4868 = dma.done.wait (%p5776_p2), [#allocation26], 1040  }
 0x1f0   : > { %4870 = vsyncadd (%p5777_p8), [#allocation26], 4294966256  ;;  %p5778_p4 = pmov %p5767_p0 }
 0x1f1   : > { %p5779_p10 = pmov %p5767_p0 }
 0x1f2   : > { %4872 = dma.done.wait (%p5778_p4), [#allocation29], 2064  }
 0x1f3   : > { %4874 = vsyncadd (%p5779_p10), [#allocation29], 4294965232  ;;  %v779_v0 = vld [vmem:[#allocation7] sm:$0xff]  ;;  %v780_v1 = vld [vmem:[#allocation7 + $0x8] sm:$0xff]  ;;  %vm794_vm0 = vcmask 523264   ;;  %vm896_vm1 = vcmask 58368  }
 0x1f4   : > { %v781_v2 = vld [vmem:[#allocation7 + $0x10] sm:$0xff]  ;;  %v3977_v3 = vpack.c.bf16 %v780_v1, %v779_v0  ;;  %v782_v4 = vld [vmem:[#allocation7 + $0x18] sm:$0xff]  ;;  %v783_v6 = vld [vmem:[#allocation7 + $0x20] sm:$0xff]  ;;  %v4914_v14 = vmov 0.0   ;;  %vm899_vm2 = vcmask 64512   ;;  %s4915_s26 = smov 112  }
 0x1f5   : > { %v3981_v5 = vpack.c.bf16 %v782_v4, %v781_v2  ;;  %v784_v7 = vld [vmem:[#allocation7 + $0x28] sm:$0xff]  ;;  %v777_v8 = vld [vmem:[%s5481_s29] sm:$0xff]  ;;  %v786_v11 = vld [vmem:[#allocation7 + $0x38] sm:$0xff]  ;;  %897 = vst.msk [vmem:[#allocation2] sm:$0x3] %vm896_vm1, %v4914_v14  ;;  %s4916_s24 = smov 120  }
 0x1f6   : > { %3978 = vmatprep.subr.bf16.mxu0 %v3977_v3  ;;  %3796 = vmatprep.mubr.msk.f32.mxu0 %vm794_vm0, %v777_v8  ;;  %v3985_v9 = vpack.c.bf16 %v784_v7, %v783_v6  ;;  %v785_v10 = vld [vmem:[#allocation7 + $0x30] sm:$0xff]  ;;  %v5522_v13 = vld [vmem:[%s5481_s29 + $0x8] sm:$0xff]  ;;  %898 = vst.msk [vmem:[#allocation2 + $0x12] sm:$0x3] %vm896_vm1, %v4914_v14  ;;  %v3589_v17 = vld [vmem:[#allocation9] ss:$0 sm:$0xff] }
 0x1f7   : > { %3980 = vmatpush3.bf16.msra.mxu0 %v3977_v3  ;;  %v3989_v12 = vpack.c.bf16 %v786_v11, %v785_v10  ;;  %v904_v15 = vld [vmem:[#allocation13] sm:$0xff]  ;;  %v994_v16 = vld [vmem:[#allocation13 + $0x8] sm:$0xff]  ;;  %v3592_v21 = vld [vmem:[#allocation10] ss:$0 sm:$0xff]  ;;  %s4917_s3 = smov 104   ;;  %s4918_s25 = smov 96  }
 0x1f8   : > { %3982 = vmatprep.subr.bf16.mxu0 %v3981_v5  ;;  %3799 = vmatprep.subr.mxu1 %v904_v15  ;;  %v3593_v24 = vld [vmem:[#allocation12] ss:$0 sm:$0xff]  ;;  %v1081_v33 = vld [vmem:[#allocation13 + $0x10] sm:$0xff]  ;;  %s4919_s30 = smov 88   ;;  %s4920_s22 = smov 80   ;;  %v1288_v38 = vld [vmem:[#allocation13 + $0x20] sm:$0xff] }
 0x1f9   : > { %3800 = vmatpush3.msra.mxu1 %v904_v15  ;;  %v1198_v37 = vld [vmem:[#allocation13 + $0x18] sm:$0xff]  ;;  %v3594_v39 = vld [vmem:[#allocation15] ss:$0 sm:$0xff]  ;;  %v3601_v44 = vld [vmem:[#allocation16] ss:$0 sm:$0xff]  ;;  %s4921_s0 = smov 8  }
 0x1fa   : > { %3804 = vmatprep.subr.mxu1 %v994_v16  ;;  %v3602_v47 = vld [vmem:[#allocation18] ss:$0 sm:$0xff]  ;;  %v1375_v58 = vld [vmem:[#allocation13 + $0x28] sm:$0xff]  ;;  %v1499_v0 = vld [vmem:[#allocation13 + $0x30] sm:$0xff]  ;;  %vm1483_vm3 = vcmask 130112   ;;  %s4922_s18 = smov 16  }
 0x1fb   : > { %3984 = vmatpush3.bf16.msra.mxu0 %v3981_v5  ;;  %v1589_v63 = vld [vmem:[#allocation13 + $0x38] sm:$0xff]  ;;  %v1676_v1 = vld [vmem:[#allocation13 + $0x40] sm:$0xff]  ;;  %v3603_v2 = vld [vmem:[#allocation15 + $0x1] ss:$0 sm:$0xff]  ;;  %vm1784_vm4 = vcmask 195712   ;;  %s4923_s1 = smov 24  }
 0x1fc   : > { %3986 = vmatprep.subr.bf16.mxu0 %v3985_v9  ;;  %v3610_v7 = vld [vmem:[#allocation16 + $0x1] ss:$0 sm:$0xff]  ;;  %v3611_v11 = vld [vmem:[#allocation18 + $0x1] ss:$0 sm:$0xff]  ;;  %vm2085_vm5 = vcmask 261312   ;;  %vm2386_vm6 = vcmask 326912  }
 0x1fd   : > { %vm2687_vm7 = vcmask 392512   ;;  %vm2988_vm8 = vcmask 458112   ;;  %vm2991_vm9 = vcmask 523712   ;;  %vm4928_vm10 = vmmov 0   ;;  %p5782_p0 = scmp.ne.s32.totalorder %s5754_s16, 0 }
 0x1ff   : > { %3988 = vmatpush3.bf16.msra.mxu0 %v3985_v9 }
 0x200   : > { %3990 = vmatprep.subr.bf16.mxu0 %v3989_v12 }
 0x203   : > { %3992 = vmatpush3.bf16.msra.mxu0 %v3989_v12 }
 0x204   : > { %3834 = vmatprep.subr.mxu0 %v1589_v63 }
 0x206   : > { %3797 = vmatmul.mubr.msk.f32.vlgmr.msra.gmra.mrb[0].mxu0 %vm794_vm0, %v5522_v13 }
 0x207   : > { %3835 = vmatpush3.msra.mxu0 %v1589_v63 }
 0x208   : > { %3839 = vmatprep.subr.mxu0 %v1676_v1 }
 0x2d9   : > { %v3798_v18 = vpop.f32.mrb[0].mxu0 }
 0x2da   : > { %v873_v19 = vadd.f32 %v3798_v18, %v3589_v17  ;;  %v867_v20 = vpop.f32.mrb[1].mxu0 }
 0x2db   : > { %v868_v22 = vadd.f32 %v3589_v17, %v867_v20 }
 0x2dc   : > { %v877_v23 = vmax.f32 %v873_v19, 0.0 }
 0x2dd   : > { %v876_v25 = vmax.f32 %v868_v22, 0.0 }
 0x2de   : > { %v886_v26 = vmul.f32 %v3592_v21, %v877_v23 }
 0x2df   : > { %v885_v27 = vmul.f32 %v3592_v21, %v876_v25 }
 0x2e0   : > { %v5528_v28 = vadd.f32 %v3593_v24, %v886_v26 }
 0x2e1   : > { %v5530_v29 = vadd.f32 %v3593_v24, %v885_v27 }
 0x2e2   : > { %901 = vst.msk [vmem:[#allocation2 + $0xa] sm:$0xff] %vm899_vm2, %v5528_v28 }
 0x2e3   : > { %900 = vst.msk [vmem:[#allocation2 + $0x2] sm:$0xff] %vm899_vm2, %v5530_v29  ;;  %1486 = vrot.lane.b32.xlu1 %v5530_v29, %s4915_s26  ;;  %1185 = vrot.lane.b32.xlu0 %v5530_v29, %s4916_s24 }
 0x2e7   : > { %1488 = vrot.lane.b32.xlu1 %v5528_v28, %s4915_s26  ;;  %1187 = vrot.lane.b32.xlu0 %v5528_v28, %s4916_s24  ;;  %s4924_s26 = smov 32   ;;  %s4925_s24 = smov 40  }
 0x2e9   : > { %v992_v34 = vld [vmem:[#allocation2 + $0xa] sm:$0xff] }
 0x2ea   : > { %v902_v30 = vld [vmem:[#allocation2] sm:$0xff]  ;;  %v903_v31 = vld [vmem:[#allocation2 + $0x8] sm:$0xff] }
 0x2eb   : > { %1789 = vrot.lane.b32.xlu1 %v5528_v28, %s4917_s3  ;;  %1787 = vrot.lane.b32.xlu0 %v5530_v29, %s4917_s3  ;;  %v991_v32 = vld [vmem:[#allocation2 + $0x2] sm:$0xff]  ;;  %v1079_v36 = vld [vmem:[#allocation2 + $0xc] sm:$0xff]  ;;  %s4926_s3 = smov 48  }
 0x2ec   : > { %3801 = vmatprep.mubr.msk.f32.mxu1 %vm899_vm2, %v902_v30  ;;  %v1078_v35 = vld [vmem:[#allocation2 + $0x4] sm:$0xff] }
 0x2ed   : > { %3802 = vmatmul.mubr.msk.f32.vlgmr.msra.gmra.mrb[0].mxu1 %vm899_vm2, %v903_v31 }
 0x2ee   : > { %3805 = vmatpush3.msra.mxu1 %v994_v16  ;;  %3806 = vmatprep.mubr.msk.f32.mxu1 %vm899_vm2, %v991_v32 }
 0x2ef   : > { %2090 = vrot.lane.b32.xlu1 %v5528_v28, %s4918_s25  ;;  %2088 = vrot.lane.b32.xlu0 %v5530_v29, %s4918_s25  ;;  %s3670_s25 = sshll.u32 %s5763_s2, 8 }
 0x2f0   : > { %3809 = vmatprep.subr.mxu1 %v1081_v33 }
 0x2f3   : > { %2391 = vrot.lane.b32.xlu1 %v5528_v28, %s4919_s30  ;;  %2389 = vrot.lane.b32.xlu0 %v5530_v29, %s4919_s30  ;;  %s776_s30 = scalar_lea.vmem [#allocation31], %s3571_s21 }
 0x2f5   : > { %3807 = vmatmul.mubr.msk.f32.vlgmr.msra.gmra.mrb[0].mxu1 %vm899_vm2, %v992_v34 }
 0x2f6   : > { %3810 = vmatpush3.msra.mxu1 %v1081_v33  ;;  %3811 = vmatprep.mubr.msk.f32.mxu1 %vm899_vm2, %v1078_v35 }
 0x2f7   : > { %2692 = vrot.lane.b32.xlu1 %v5528_v28, %s4920_s22  ;;  %2690 = vrot.lane.b32.xlu0 %v5530_v29, %s4920_s22  ;;  %s3323_s22 = sshll.u32 %s776_s30, 4  ;;  %s5643_s22 = int_to_ptr.vmem [resolvable:$true] %s3323_s22 }
 0x2f8   : > { %3814 = vmatprep.subr.mxu1 %v1198_v37  ;;  %s4795_s2 = scalar_lea.vmem %s5643_s22, 256 }
 0x2f9   : > { %p4796_p11 = scmp.ne.s32.totalorder %s5643_s22, %s4795_s2 }
 0x2fb   : > { %p4797_p5 = pnand %p4796_p11, %p5782_p0 }
 0x2fd   : > { %3812 = vmatmul.mubr.msk.f32.vlgmr.msra.gmra.mrb[0].mxu1 %vm899_vm2, %v1079_v36  ;;  %p4798_p7 = pneg %p4797_p5 }
 0x2fe   : > { %3815 = vmatpush3.msra.mxu1 %v1198_v37 }
 0x2ff   : > { %3819 = vmatprep.subr.mxu1 %v1288_v38 }
 0x355   : > { %v1186_v43 = vpop.permute.xlu0 %1185  ;;  %v1487_v6 = vpop.permute.xlu1 %1486 }
 0x359   : > { %v1188_v52 = vpop.permute.xlu0 %1187  ;;  %v1489_v17 = vpop.permute.xlu1 %1488 }
 0x35d   : > { %v1790_v27 = vpop.permute.xlu1 %1789  ;;  %v1788_v30 = vpop.permute.xlu0 %1787 }
 0x361   : > { %v5574_v31 = vpop.permute.xlu1 %2090  ;;  %v5576_v32 = vpop.permute.xlu0 %2088 }
 0x365   : > { %v5578_v33 = vpop.permute.xlu1 %2391  ;;  %v5580_v34 = vpop.permute.xlu0 %2389 }
 0x369   : > { %v5582_v35 = vpop.permute.xlu1 %2692  ;;  %v5584_v36 = vpop.permute.xlu0 %2690 }
 0x3d0   : > { %v3813_v40 = vpop.f32.mrb[0].mxu1 }
 0x3d1   : > { %v4045_v41 = vadd.f32 %v3813_v40, %v3594_v39  ;;  %v1154_v42 = vpop.f32.mrb[1].mxu1  ;;  %v1890_v40 = vld [vmem:[#allocation13 + $0x50] sm:$0xff] }
 0x3d2   : > { %v4046_v45 = vadd.f32 %v3594_v39, %v1154_v42  ;;  %v1800_v39 = vld [vmem:[#allocation13 + $0x48] sm:$0xff] }
 0x3d3   : > { %v1166_v46 = vmax.f32 %v4045_v41, 0.0 }
 0x3d4   : > { %v1165_v48 = vmax.f32 %v4046_v45, 0.0 }
 0x3d5   : > { %v1173_v49 = vmul.f32 %v3601_v44, %v1166_v46 }
 0x3d6   : > { %v1172_v50 = vmul.f32 %v3601_v44, %v1165_v48 }
 0x3d7   : > { %v1180_v51 = vadd.f32 %v3602_v47, %v1173_v49  ;;  %v3619_v49 = vld [vmem:[#allocation16 + $0x2] ss:$0 sm:$0xff] }
 0x3d8   : > { %v1179_v53 = vadd.f32 %v3602_v47, %v1172_v50 }
 0x3d9   : > { %v1192_v54 = vadd.f32 %v1188_v52, %v1180_v51  ;;  %1182 = vst.msk [vmem:[#allocation3 + $0x8] sm:$0xff] %vm899_vm2, %v1180_v51 }
 0x3da   : > { %v1191_v55 = vadd.f32 %v1186_v43, %v1179_v53  ;;  %1181 = vst.msk [vmem:[#allocation3] sm:$0xff] %vm899_vm2, %v1179_v53  ;;  %v3612_v43 = vld [vmem:[#allocation15 + $0x2] ss:$0 sm:$0xff]  ;;  %v3620_v53 = vld [vmem:[#allocation18 + $0x2] ss:$0 sm:$0xff] }
 0x3db   : > { %1194 = vst.msk [vmem:[#allocation2 + $0xa] sm:$0xff] %vm899_vm2, %v1192_v54 }
 0x3dc   : > { %1193 = vst.msk [vmem:[#allocation2 + $0x2] sm:$0xff] %vm899_vm2, %v1191_v55 }
 0x3e2   : > { %v1286_v60 = vld [vmem:[#allocation2 + $0xa] sm:$0xff] }
 0x3e3   : > { %v1195_v56 = vld [vmem:[#allocation2] sm:$0xff]  ;;  %v1196_v57 = vld [vmem:[#allocation2 + $0x8] sm:$0xff] }
 0x3e4   : > { %3816 = vmatprep.mubr.msk.f32.mxu1 %vm899_vm2, %v1195_v56  ;;  %v1285_v59 = vld [vmem:[#allocation2 + $0x2] sm:$0xff]  ;;  %v1373_v62 = vld [vmem:[#allocation2 + $0xc] sm:$0xff] }
 0x3e5   : > { %3817 = vmatmul.mubr.msk.f32.vlgmr.msra.gmra.mrb[2].mxu1 %vm899_vm2, %v1196_v57  ;;  %v1372_v61 = vld [vmem:[#allocation2 + $0x4] sm:$0xff] }
 0x3e6   : > { %3820 = vmatpush3.msra.mxu1 %v1288_v38  ;;  %3821 = vmatprep.mubr.msk.f32.mxu1 %vm899_vm2, %v1285_v59 }
 0x3e7   : > { %3824 = vmatprep.subr.mxu1 %v1375_v58 }
 0x3ed   : > { %3822 = vmatmul.mubr.msk.f32.vlgmr.msra.gmra.mrb[2].mxu1 %vm899_vm2, %v1286_v60 }
 0x3ee   : > { %3825 = vmatpush3.msra.mxu1 %v1375_v58  ;;  %3826 = vmatprep.mubr.msk.f32.mxu1 %vm899_vm2, %v1372_v61 }
 0x3ef   : > { %3829 = vmatprep.subr.mxu1 %v1499_v0 }
 0x3f5   : > { %3827 = vmatmul.mubr.msk.f32.vlgmr.msra.gmra.mrb[2].mxu1 %vm899_vm2, %v1373_v62  ;;  %v1977_v62 = vld [vmem:[#allocation13 + $0x58] sm:$0xff] }
 0x3f6   : > { %3830 = vmatpush3.msra.mxu1 %v1499_v0 }
 0x3f7   : > { %3844 = vmatprep.subr.mxu1 %v1800_v39 }
 0x4c8   : > { %v3828_v3 = vpop.f32.mrb[2].mxu1 }
 0x4c9   : > { %v4047_v4 = vadd.f32 %v3828_v3, %v3603_v2  ;;  %v1448_v5 = vpop.f32.mrb[3].mxu1 }
 0x4ca   : > { %v4048_v8 = vadd.f32 %v3603_v2, %v1448_v5  ;;  %v2101_v5 = vld [vmem:[#allocation13 + $0x60] sm:$0xff] }
 0x4cb   : > { %v1460_v9 = vmax.f32 %v4047_v4, 0.0 }
 0x4cc   : > { %v1459_v10 = vmax.f32 %v4048_v8, 0.0 }
 0x4cd   : > { %v1467_v12 = vmul.f32 %v3610_v7, %v1460_v9 }
 0x4ce   : > { %v1466_v15 = vmul.f32 %v3610_v7, %v1459_v10  ;;  %v3621_v7 = vld [vmem:[#allocation15 + $0x3] ss:$0 sm:$0xff] }
 0x4cf   : > { %v1474_v16 = vadd.f32 %v3611_v11, %v1467_v12 }
 0x4d0   : > { %v1473_v18 = vadd.f32 %v3611_v11, %v1466_v15  ;;  %v3628_v11 = vld [vmem:[#allocation16 + $0x3] ss:$0 sm:$0xff] }
 0x4d1   : > { %1479 = vrot.lane.b32.xlu1 %v1474_v16, %s4921_s0  ;;  %v1493_v19 = vadd.f32 %v1489_v17, %v1474_v16  ;;  %v3629_v17 = vld [vmem:[#allocation18 + $0x3] ss:$0 sm:$0xff] }
 0x4d2   : > { %1477 = vrot.lane.b32.xlu0 %v1473_v18, %s4921_s0  ;;  %v1492_v20 = vadd.f32 %v1487_v6, %v1473_v18  ;;  %v2191_v6 = vld [vmem:[#allocation13 + $0x68] sm:$0xff] }
 0x4d3   : > { %1495 = vst.msk [vmem:[#allocation2 + $0xa] sm:$0xff] %vm899_vm2, %v1493_v19 }
 0x4d4   : > { %1494 = vst.msk [vmem:[#allocation2 + $0x2] sm:$0xff] %vm899_vm2, %v1492_v20 }
 0x4da   : > { %v1587_v24 = vld [vmem:[#allocation2 + $0xa] sm:$0xff] }
 0x4db   : > { %v1496_v21 = vld [vmem:[#allocation2] sm:$0xff]  ;;  %v1497_v23 = vld [vmem:[#allocation2 + $0x8] sm:$0xff] }
 0x4dc   : > { %v1586_v22 = vld [vmem:[#allocation2 + $0x2] sm:$0xff]  ;;  %3831 = vmatprep.mubr.msk.f32.mxu1 %vm899_vm2, %v1496_v21  ;;  %v1674_v26 = vld [vmem:[#allocation2 + $0xc] sm:$0xff] }
 0x4dd   : > { %3836 = vmatprep.mubr.msk.f32.mxu0 %vm899_vm2, %v1586_v22  ;;  %3832 = vmatmul.mubr.msk.f32.vlgmr.msra.gmra.mrb[4].mxu1 %vm899_vm2, %v1497_v23  ;;  %v1673_v25 = vld [vmem:[#allocation2 + $0x4] sm:$0xff] }
 0x4de   : > { %3837 = vmatmul.mubr.msk.f32.vlgmr.msra.gmra.mrb[2].mxu0 %vm899_vm2, %v1587_v24  ;;  %3845 = vmatpush3.msra.mxu1 %v1800_v39  ;;  %v2402_v39 = vld [vmem:[#allocation13 + $0x78] sm:$0xff] }
 0x4df   : > { %3840 = vmatpush3.msra.mxu0 %v1676_v1  ;;  %3841 = vmatprep.mubr.msk.f32.mxu0 %vm899_vm2, %v1673_v25 }
 0x4e0   : > { %3849 = vmatprep.subr.mxu1 %v1890_v40  ;;  %3859 = vmatprep.subr.mxu0 %v2101_v5 }
 0x4e6   : > { %3842 = vmatmul.mubr.msk.f32.vlgmr.msra.gmra.mrb[2].mxu0 %vm899_vm2, %v1674_v26  ;;  %v2278_v26 = vld [vmem:[#allocation13 + $0x70] sm:$0xff] }
 0x4e7   : > { %3860 = vmatpush3.msra.mxu0 %v2101_v5  ;;  %v3646_v5 = vld [vmem:[#allocation16 + $0x5] ss:$0 sm:$0xff] }
 0x4e8   : > { %3864 = vmatprep.subr.mxu0 %v2191_v6 }
 0x543   : > { %v1480_v37 = vpop.permute.xlu1 %1479 }
 0x544   : > { %1485 = vst.msk [vmem:[#allocation3 + $0x8] sm:$0xff] %vm1483_vm3, %v1480_v37  ;;  %v1478_v38 = vpop.permute.xlu0 %1477 }
 0x545   : > { %1484 = vst.msk [vmem:[#allocation3] sm:$0xff] %vm1483_vm3, %v1478_v38 }
 0x5b0   : > { %v3833_v41 = vpop.f32.mrb[4].mxu1 }
 0x5b1   : > { %v1577_v42 = vpop.f32.mrb[5].mxu1  ;;  %v1583_v44 = vadd.f32 %v3833_v41, %v3612_v43  ;;  %v3630_v41 = vld [vmem:[#allocation15 + $0x4] ss:$0 sm:$0xff] }
 0x5b2   : > { %v1578_v45 = vadd.f32 %v3612_v43, %v1577_v42 }
 0x5b9   : > { %v3843_v46 = vpop.f32.mrb[2].mxu0 }
 0x5ba   : > { %v4050_v47 = vadd.f32 %v3843_v46, %v1583_v44  ;;  %v1749_v48 = vpop.f32.mrb[3].mxu0 }
 0x5bb   : > { %v4052_v50 = vadd.f32 %v1749_v48, %v1578_v45  ;;  %v3637_v45 = vld [vmem:[#allocation16 + $0x4] ss:$0 sm:$0xff] }
 0x5bc   : > { %v1761_v51 = vmax.f32 %v4050_v47, 0.0 }
 0x5bd   : > { %v1760_v52 = vmax.f32 %v4052_v50, 0.0 }
 0x5be   : > { %v1768_v54 = vmul.f32 %v3619_v49, %v1761_v51 }
 0x5bf   : > { %v1767_v55 = vmul.f32 %v3619_v49, %v1760_v52  ;;  %v3638_v49 = vld [vmem:[#allocation18 + $0x4] ss:$0 sm:$0xff] }
 0x5c0   : > { %v1775_v56 = vadd.f32 %v3620_v53, %v1768_v54 }
 0x5c1   : > { %v1774_v57 = vadd.f32 %v3620_v53, %v1767_v55 }
 0x5c2   : > { %1780 = vrot.lane.b32.xlu1 %v1775_v56, %s4922_s18  ;;  %v1794_v58 = vadd.f32 %v1790_v27, %v1775_v56 }
 0x5c3   : > { %1778 = vrot.lane.b32.xlu0 %v1774_v57, %s4922_s18  ;;  %v1793_v59 = vadd.f32 %v1788_v30, %v1774_v57 }
 0x5c4   : > { %1796 = vst.msk [vmem:[#allocation2 + $0xa] sm:$0xff] %vm899_vm2, %v1794_v58  ;;  %v2579_v58 = vld [vmem:[#allocation13 + $0x88] sm:$0xff] }
 0x5c5   : > { %1795 = vst.msk [vmem:[#allocation2 + $0x2] sm:$0xff] %vm899_vm2, %v1793_v59 }
 0x5cb   : > { %v1888_v0 = vld [vmem:[#allocation2 + $0xa] sm:$0xff] }
 0x5cc   : > { %v1797_v60 = vld [vmem:[#allocation2] sm:$0xff]  ;;  %v1798_v61 = vld [vmem:[#allocation2 + $0x8] sm:$0xff] }
 0x5cd   : > { %3846 = vmatprep.mubr.msk.f32.mxu1 %vm899_vm2, %v1797_v60  ;;  %v1887_v63 = vld [vmem:[#allocation2 + $0x2] sm:$0xff]  ;;  %v1975_v2 = vld [vmem:[#allocation2 + $0xc] sm:$0xff] }
 0x5ce   : > { %3847 = vmatmul.mubr.msk.f32.vlgmr.msra.gmra.mrb[6].mxu1 %vm899_vm2, %v1798_v61  ;;  %v1974_v1 = vld [vmem:[#allocation2 + $0x4] sm:$0xff] }
 0x5cf   : > { %3850 = vmatpush3.msra.mxu1 %v1890_v40  ;;  %3851 = vmatprep.mubr.msk.f32.mxu1 %vm899_vm2, %v1887_v63  ;;  %v2492_v40 = vld [vmem:[#allocation13 + $0x80] sm:$0xff]  ;;  %v2703_v63 = vld [vmem:[#allocation13 + $0x90] sm:$0xff] }
 0x5d0   : > { %3854 = vmatprep.subr.mxu1 %v1977_v62 }
 0x5d6   : > { %3852 = vmatmul.mubr.msk.f32.vlgmr.msra.gmra.mrb[6].mxu1 %vm899_vm2, %v1888_v0  ;;  %v2793_v0 = vld [vmem:[#allocation13 + $0x98] sm:$0xff] }
 0x5d7   : > { %3855 = vmatpush3.msra.mxu1 %v1977_v62  ;;  %3856 = vmatprep.mubr.msk.f32.mxu1 %vm899_vm2, %v1974_v1  ;;  %v3639_v1 = vld [vmem:[#allocation15 + $0x5] ss:$0 sm:$0xff] }
 0x5d8   : > { %3874 = vmatprep.subr.mxu1 %v2402_v39 }
 0x5de   : > { %3857 = vmatmul.mubr.msk.f32.vlgmr.msra.gmra.mrb[6].mxu1 %vm899_vm2, %v1975_v2 }
 0x5df   : > { %3875 = vmatpush3.msra.mxu1 %v2402_v39  ;;  %v3648_v39 = vld [vmem:[#allocation15 + $0x6] ss:$0 sm:$0xff] }
 0x5e0   : > { %3879 = vmatprep.subr.mxu1 %v2492_v40 }
 0x634   : > { %v1781_v3 = vpop.permute.xlu1 %1780 }
 0x635   : > { %1786 = vst.msk [vmem:[#allocation3 + $0x8] sm:$0xff] %vm1784_vm4, %v1781_v3  ;;  %v1779_v4 = vpop.permute.xlu0 %1778 }
 0x636   : > { %1785 = vst.msk [vmem:[#allocation3] sm:$0xff] %vm1784_vm4, %v1779_v4 }
 0x6b1   : > { %v3858_v8 = vpop.f32.mrb[6].mxu1 }
 0x6b2   : > { %v4053_v9 = vadd.f32 %v3858_v8, %v3621_v7  ;;  %v2050_v10 = vpop.f32.mrb[7].mxu1 }
 0x6b3   : > { %v4054_v12 = vadd.f32 %v3621_v7, %v2050_v10 }
 0x6b4   : > { %v2062_v15 = vmax.f32 %v4053_v9, 0.0  ;;  %v3647_v9 = vld [vmem:[#allocation18 + $0x5] ss:$0 sm:$0xff] }
 0x6b5   : > { %v2061_v16 = vmax.f32 %v4054_v12, 0.0 }
 0x6b6   : > { %v2069_v18 = vmul.f32 %v3628_v11, %v2062_v15 }
 0x6b7   : > { %v2068_v19 = vmul.f32 %v3628_v11, %v2061_v16 }
 0x6b8   : > { %v2076_v20 = vadd.f32 %v3629_v17, %v2069_v18 }
 0x6b9   : > { %v2075_v21 = vadd.f32 %v3629_v17, %v2068_v19 }
 0x6ba   : > { %2081 = vrot.lane.b32.xlu1 %v2076_v20, %s4923_s1  ;;  %v2095_v22 = vadd.f32 %v5574_v31, %v2076_v20  ;;  %v2880_v20 = vld [vmem:[#allocation13 + $0xa0] sm:$0xff] }
 0x6bb   : > { %2079 = vrot.lane.b32.xlu0 %v2075_v21, %s4923_s1  ;;  %v2094_v23 = vadd.f32 %v5576_v32, %v2075_v21 }
 0x6bc   : > { %2097 = vst.msk [vmem:[#allocation2 + $0xa] sm:$0xff] %vm899_vm2, %v2095_v22 }
 0x6bd   : > { %2096 = vst.msk [vmem:[#allocation2 + $0x2] sm:$0xff] %vm899_vm2, %v2094_v23 }
 0x6c3   : > { %v2189_v30 = vld [vmem:[#allocation2 + $0xa] sm:$0xff] }
 0x6c4   : > { %v2098_v24 = vld [vmem:[#allocation2] sm:$0xff]  ;;  %v2099_v25 = vld [vmem:[#allocation2 + $0x8] sm:$0xff] }
 0x6c5   : > { %3861 = vmatprep.mubr.msk.f32.mxu0 %vm899_vm2, %v2098_v24  ;;  %v2188_v27 = vld [vmem:[#allocation2 + $0x2] sm:$0xff]  ;;  %v2276_v32 = vld [vmem:[#allocation2 + $0xc] sm:$0xff] }
 0x6c6   : > { %3862 = vmatmul.mubr.msk.f32.vlgmr.msra.gmra.mrb[4].mxu0 %vm899_vm2, %v2099_v25  ;;  %v2275_v31 = vld [vmem:[#allocation2 + $0x4] sm:$0xff]  ;;  %v2996_v25 = vld [vmem:[#allocation19] sm:$0xff] }
 0x6c7   : > { %3865 = vmatpush3.msra.mxu0 %v2191_v6  ;;  %3866 = vmatprep.mubr.msk.f32.mxu0 %vm899_vm2, %v2188_v27  ;;  %v2998_v27 = vld [vmem:[#allocation19 + $0x10] sm:$0xff] }
 0x6c8   : > { %3869 = vmatprep.subr.mxu0 %v2278_v26 }
 0x6ce   : > { %3867 = vmatmul.mubr.msk.f32.vlgmr.msra.gmra.mrb[4].mxu0 %vm899_vm2, %v2189_v30 }
 0x6cf   : > { %3870 = vmatpush3.msra.mxu0 %v2278_v26  ;;  %3871 = vmatprep.mubr.msk.f32.mxu0 %vm899_vm2, %v2275_v31  ;;  %v2997_v26 = vld [vmem:[#allocation19 + $0x8] sm:$0xff]  ;;  %v2999_v31 = vld [vmem:[#allocation19 + $0x18] sm:$0xff] }
 0x6d0   : > { %3889 = vmatprep.subr.mxu0 %v2703_v63  ;;  %v3993_v30 = vpack.c.bf16 %v2997_v26, %v2996_v25  ;;  %v3657_v25 = vld [vmem:[#allocation21] ss:$0 sm:$0xff] }
 0x6d6   : > { %3872 = vmatmul.mubr.msk.f32.vlgmr.msra.gmra.mrb[4].mxu0 %vm899_vm2, %v2276_v32  ;;  %v3997_v32 = vpack.c.bf16 %v2999_v31, %v2998_v27  ;;  %v3660_v31 = vld [vmem:[#allocation22] ss:$0 sm:$0xff] }
 0x6d7   : > { %3890 = vmatpush3.msra.mxu0 %v2703_v63  ;;  %v3126_v63 = vld [vmem:[#allocation25 + $0x18] sm:$0xff] }
 0x6d8   : > { %3894 = vmatprep.subr.mxu0 %v2793_v0 }
 0x72c   : > { %v2082_v37 = vpop.permute.xlu1 %2081 }
 0x72d   : > { %2087 = vst.msk [vmem:[#allocation3 + $0x8] sm:$0xff] %vm2085_vm5, %v2082_v37  ;;  %v2080_v38 = vpop.permute.xlu0 %2079  ;;  %v3000_v37 = vld [vmem:[#allocation19 + $0x20] sm:$0xff] }
 0x72e   : > { %2086 = vst.msk [vmem:[#allocation3] sm:$0xff] %vm2085_vm5, %v2080_v38  ;;  %v3001_v38 = vld [vmem:[#allocation19 + $0x28] sm:$0xff] }
 0x7a9   : > { %v3873_v42 = vpop.f32.mrb[4].mxu0 }
 0x7aa   : > { %v4055_v43 = vadd.f32 %v3873_v42, %v3630_v41  ;;  %v2351_v44 = vpop.f32.mrb[5].mxu0  ;;  %v3003_v42 = vld [vmem:[#allocation19 + $0x38] sm:$0xff] }
 0x7ab   : > { %v4056_v46 = vadd.f32 %v3630_v41, %v2351_v44  ;;  %v3002_v41 = vld [vmem:[#allocation19 + $0x30] sm:$0xff] }
 0x7ac   : > { %v2363_v47 = vmax.f32 %v4055_v43, 0.0  ;;  %v4005_v43 = vpack.c.bf16 %v3003_v42, %v3002_v41 }
 0x7ad   : > { %v2362_v48 = vmax.f32 %v4056_v46, 0.0 }
 0x7ae   : > { %v2370_v50 = vmul.f32 %v3637_v45, %v2363_v47  ;;  %v3655_v47 = vld [vmem:[#allocation16 + $0x6] ss:$0 sm:$0xff] }
 0x7af   : > { %v2369_v51 = vmul.f32 %v3637_v45, %v2362_v48 }
 0x7b0   : > { %v2377_v52 = vadd.f32 %v3638_v49, %v2370_v50 }
 0x7b1   : > { %v2376_v53 = vadd.f32 %v3638_v49, %v2369_v51  ;;  %v3656_v51 = vld [vmem:[#allocation18 + $0x6] ss:$0 sm:$0xff] }
 0x7b2   : > { %2382 = vrot.lane.b32.xlu1 %v2377_v52, %s4924_s26  ;;  %v2396_v54 = vadd.f32 %v5578_v33, %v2377_v52 }
 0x7b3   : > { %2380 = vrot.lane.b32.xlu0 %v2376_v53, %s4924_s26  ;;  %v2395_v55 = vadd.f32 %v5580_v34, %v2376_v53  ;;  %s5780_s26 = sld [smem:[#allocation54_spill]] }
 0x7b4   : > { %2398 = vst.msk [vmem:[#allocation2 + $0xa] sm:$0xff] %vm899_vm2, %v2396_v54 }
 0x7b5   : > { %2397 = vst.msk [vmem:[#allocation2 + $0x2] sm:$0xff] %vm899_vm2, %v2395_v55 }
 0x7bb   : > { %v2490_v33 = vld [vmem:[#allocation2 + $0xa] sm:$0xff] }
 0x7bc   : > { %v2399_v56 = vld [vmem:[#allocation2] sm:$0xff]  ;;  %v2400_v57 = vld [vmem:[#allocation2 + $0x8] sm:$0xff] }
 0x7bd   : > { %3876 = vmatprep.mubr.msk.f32.mxu1 %vm899_vm2, %v2399_v56  ;;  %v2489_v59 = vld [vmem:[#allocation2 + $0x2] sm:$0xff]  ;;  %v2577_v60 = vld [vmem:[#allocation2 + $0xc] sm:$0xff] }
 0x7be   : > { %3877 = vmatmul.mubr.msk.f32.vlgmr.msra.gmra.mrb[8].mxu1 %vm899_vm2, %v2400_v57  ;;  %v2576_v34 = vld [vmem:[#allocation2 + $0x4] sm:$0xff] }
 0x7bf   : > { %3880 = vmatpush3.msra.mxu1 %v2492_v40  ;;  %3881 = vmatprep.mubr.msk.f32.mxu1 %vm899_vm2, %v2489_v59  ;;  %v4001_v40 = vpack.c.bf16 %v3001_v38, %v3000_v37  ;;  %v3661_v38 = vld [vmem:[#allocation24] ss:$0 sm:$0xff] }
 0x7c0   : > { %3884 = vmatprep.subr.mxu1 %v2579_v58 }
 0x7c6   : > { %3882 = vmatmul.mubr.msk.f32.vlgmr.msra.gmra.mrb[8].mxu1 %vm899_vm2, %v2490_v33  ;;  %v3123_v33 = vld [vmem:[#allocation25] sm:$0xff] }
 0x7c7   : > { %3885 = vmatpush3.msra.mxu1 %v2579_v58  ;;  %3886 = vmatprep.mubr.msk.f32.mxu1 %vm899_vm2, %v2576_v34  ;;  %v3124_v34 = vld [vmem:[#allocation25 + $0x8] sm:$0xff] }
 0x7ce   : > { %3887 = vmatmul.mubr.msk.f32.vlgmr.msra.gmra.mrb[8].mxu1 %vm899_vm2, %v2577_v60  ;;  %v4010_v60 = vpack.c.bf16 %v3124_v34, %v3123_v33 }
 0x7cf   : > { %3974 = vmatprep.mubr.msk.f32.mxu1 %vm4928_vm10, %v4914_v14 }
 0x824   : > { %v2383_v61 = vpop.permute.xlu1 %2382 }
 0x825   : > { %2388 = vst.msk [vmem:[#allocation3 + $0x8] sm:$0xff] %vm2386_vm6, %v2383_v61  ;;  %v2381_v62 = vpop.permute.xlu0 %2380  ;;  %v4927_v61 = vmov 0.0|0.0  }
 0x826   : > { %2387 = vst.msk [vmem:[#allocation3] sm:$0xff] %vm2386_vm6, %v2381_v62  ;;  %4021 = vmatprep.subr.bf16.mxu1 %v4927_v61  ;;  %v3125_v62 = vld [vmem:[#allocation25 + $0x10] sm:$0xff] }
 0x8a1   : > { %v3888_v2 = vpop.f32.mrb[8].mxu1 }
 0x8a2   : > { %v4057_v3 = vadd.f32 %v3888_v2, %v3639_v1  ;;  %v2652_v4 = vpop.f32.mrb[9].mxu1  ;;  %v3129_v2 = vld [vmem:[#allocation25 + $0x30] sm:$0xff] }
 0x8a3   : > { %v4058_v6 = vadd.f32 %v3639_v1, %v2652_v4 }
 0x8a4   : > { %v2664_v7 = vmax.f32 %v4057_v3, 0.0  ;;  %v3130_v3 = vld [vmem:[#allocation25 + $0x38] sm:$0xff] }
 0x8a5   : > { %v2663_v8 = vmax.f32 %v4058_v6, 0.0  ;;  %v4019_v4 = vpack.c.bf16 %v3130_v3, %v3129_v2  ;;  %v3207_v6 = vld [vmem:[#allocation28 + $0x8] sm:$0xff] }
 0x8a6   : > { %v2671_v10 = vmul.f32 %v3646_v5, %v2664_v7  ;;  %v3208_v7 = vld [vmem:[#allocation28 + $0x10] sm:$0xff] }
 0x8a7   : > { %v2670_v11 = vmul.f32 %v3646_v5, %v2663_v8  ;;  %v3206_v5 = vld [vmem:[#allocation28] sm:$0xff] }
 0x8a8   : > { %v2678_v12 = vadd.f32 %v3647_v9, %v2671_v10  ;;  %v4022_v8 = vpack.c.bf16 %v3207_v6, %v3206_v5 }
 0x8a9   : > { %v2677_v15 = vadd.f32 %v3647_v9, %v2670_v11  ;;  %v3209_v9 = vld [vmem:[#allocation28 + $0x18] sm:$0xff]  ;;  %v3210_v11 = vld [vmem:[#allocation28 + $0x20] sm:$0xff] }
 0x8aa   : > { %2683 = vrot.lane.b32.xlu1 %v2678_v12, %s4925_s24  ;;  %v2697_v16 = vadd.f32 %v5582_v35, %v2678_v12  ;;  %4023 = vmatpush3.bf16.msra.mxu1 %v4022_v8  ;;  %v4025_v10 = vpack.c.bf16 %v3209_v9, %v3208_v7  ;;  %v3211_v12 = vld [vmem:[#allocation28 + $0x28] sm:$0xff] }
 0x8ab   : > { %2681 = vrot.lane.b32.xlu0 %v2677_v15, %s4925_s24  ;;  %v2696_v17 = vadd.f32 %v5584_v36, %v2677_v15  ;;  %4024 = vmatprep.subr.bf16.mxu1 %v4927_v61  ;;  %v4028_v15 = vpack.c.bf16 %v3211_v12, %v3210_v11  ;;  %s5639_s24 = scalar_lea.hbm %s5780_s26, %s3670_s25  ;;  %v4316_v8 = vld [vmem:[%s5481_s29] sm:$0xff]  ;;  %s4929_s25 = smov [#allocation31]  }
 0x8ac   : > { %2699 = vst.msk [vmem:[#allocation2 + $0xa] sm:$0xff] %vm899_vm2, %v2697_v16  ;;  %v3212_v16 = vld [vmem:[#allocation28 + $0x30] sm:$0xff]  ;;  %s4799_s29 = sshll.u32 %s4929_s25, 4  ;;  %s4800_s29 = int_to_ptr.vmem [resolvable:$false] %s4799_s29 }
 0x8ad   : > { %2698 = vst.msk [vmem:[#allocation2 + $0x2] sm:$0xff] %vm899_vm2, %v2696_v17  ;;  %v3213_v17 = vld [vmem:[#allocation28 + $0x38] sm:$0xff]  ;;  %s4801_s18 = scalar_lea.vmem %s4800_s29, 512  ;;  %p4802_p6 = scmp.lt.s32.totalorder %s5643_s22, %s4800_s29 }
 0x8ae   : > { %4026 = vmatpush3.bf16.msra.mxu1 %v4025_v10  ;;  %p4803_p9 = scmp.lt.s32.totalorder %s4801_s18, %s4795_s2 }
 0x8af   : > { %4027 = vmatprep.subr.bf16.mxu1 %v4927_v61 }
 0x8b0   : > { %p4804_p12 = por %p4803_p9, %p4802_p6 }
 0x8b2   : > { %4029 = vmatpush3.bf16.msra.mxu1 %v4028_v15  ;;  %p4805_p13 = pnand %p4804_p12, %p4798_p7 }
 0x8b3   : > { %v2791_v35 = vld [vmem:[#allocation2 + $0xa] sm:$0xff]  ;;  %4030 = vmatprep.subr.bf16.mxu1 %v4927_v61 }
 0x8b4   : > { %v2700_v18 = vld [vmem:[#allocation2] sm:$0xff]  ;;  %v2701_v19 = vld [vmem:[#allocation2 + $0x8] sm:$0xff] }
 0x8b5   : > { %3891 = vmatprep.mubr.msk.f32.mxu0 %vm899_vm2, %v2700_v18  ;;  %v2790_v21 = vld [vmem:[#allocation2 + $0x2] sm:$0xff]  ;;  %v2878_v22 = vld [vmem:[#allocation2 + $0xc] sm:$0xff]  ;;  %v4031_v18 = vpack.c.bf16 %v3213_v17, %v3212_v16 }
 0x8b6   : > { %3892 = vmatmul.mubr.msk.f32.vlgmr.msra.gmra.mrb[6].mxu0 %vm899_vm2, %v2701_v19  ;;  %v2877_v36 = vld [vmem:[#allocation2 + $0x4] sm:$0xff] }
 0x8b7   : > { %3895 = vmatpush3.msra.mxu0 %v2793_v0  ;;  %3896 = vmatprep.mubr.msk.f32.mxu0 %vm899_vm2, %v2790_v21  ;;  %v3128_v0 = vld [vmem:[#allocation25 + $0x28] sm:$0xff]  ;;  %v3216_v21 = vld [vmem:[#allocation28 + $0x50] sm:$0xff] }
 0x8b8   : > { %3899 = vmatprep.subr.mxu0 %v2880_v20  ;;  %v3215_v19 = vld [vmem:[#allocation28 + $0x48] sm:$0xff]  ;;  %4032 = vmatpush3.bf16.msra.mxu1 %v4031_v18 }
 0x8b9   : > { %4033 = vmatprep.subr.bf16.mxu1 %v4927_v61 }
 0x8be   : > { %3897 = vmatmul.mubr.msk.f32.vlgmr.msra.gmra.mrb[6].mxu0 %vm899_vm2, %v2791_v35  ;;  %v3217_v35 = vld [vmem:[#allocation28 + $0x58] sm:$0xff] }
 0x8bf   : > { %3900 = vmatpush3.msra.mxu0 %v2880_v20  ;;  %3901 = vmatprep.mubr.msk.f32.mxu0 %vm899_vm2, %v2877_v36  ;;  %v4037_v36 = vpack.c.bf16 %v3217_v35, %v3216_v21 }
 0x8c0   : > { %3994 = vmatprep.subr.bf16.mxu0 %v3993_v30 }
 0x8c6   : > { %3902 = vmatmul.mubr.msk.f32.vlgmr.msra.gmra.mrb[6].mxu0 %vm899_vm2, %v2878_v22  ;;  %v3218_v22 = vld [vmem:[#allocation28 + $0x60] sm:$0xff] }
 0x8c7   : > { %3996 = vmatpush3.bf16.msra.mxu0 %v3993_v30 }
 0x8c8   : > { %3998 = vmatprep.subr.bf16.mxu0 %v3997_v32 }
 0x8cb   : > { %4000 = vmatpush3.bf16.msra.mxu0 %v3997_v32 }
 0x8cc   : > { %4002 = vmatprep.subr.bf16.mxu0 %v4001_v40 }
 0x8cf   : > { %4004 = vmatpush3.bf16.msra.mxu0 %v4001_v40 }
 0x8d0   : > { %4006 = vmatprep.subr.bf16.mxu0 %v4005_v43 }
 0x8d3   : > { %4008 = vmatpush3.bf16.msra.mxu0 %v4005_v43 }
 0x8d4   : > { %4009 = vmatprep.subr.bf16.mxu0 %v4927_v61 }
 0x91c   : > { %v2684_v23 = vpop.permute.xlu1 %2683 }
 0x91d   : > { %2689 = vst.msk [vmem:[#allocation3 + $0x8] sm:$0xff] %vm2687_vm7, %v2684_v23  ;;  %v2682_v24 = vpop.permute.xlu0 %2681  ;;  %v3219_v23 = vld [vmem:[#allocation28 + $0x68] sm:$0xff] }
 0x91e   : > { %2688 = vst.msk [vmem:[#allocation3] sm:$0xff] %vm2687_vm7, %v2682_v24  ;;  %v4040_v24 = vpack.c.bf16 %v3219_v23, %v3218_v22 }
 0x999   : > { %v3903_v44 = vpop.f32.mrb[6].mxu0 }
 0x99a   : > { %v4059_v45 = vadd.f32 %v3903_v44, %v3648_v39  ;;  %v2953_v46 = vpop.f32.mrb[7].mxu0 }
 0x99b   : > { %v4060_v48 = vadd.f32 %v3648_v39, %v2953_v46 }
 0x99c   : > { %v2965_v49 = vmax.f32 %v4059_v45, 0.0 }
 0x99d   : > { %v2964_v50 = vmax.f32 %v4060_v48, 0.0 }
 0x99e   : > { %v2972_v52 = vmul.f32 %v3655_v47, %v2965_v49 }
 0x99f   : > { %v2971_v53 = vmul.f32 %v3655_v47, %v2964_v50 }
 0x9a0   : > { %v2979_v54 = vadd.f32 %v3656_v51, %v2972_v52 }
 0x9a1   : > { %v2978_v55 = vadd.f32 %v3656_v51, %v2971_v53 }
 0x9a2   : > { %2984 = vrot.lane.b32.xlu1 %v2979_v54, %s4926_s3  ;;  %v3220_v54 = vld [vmem:[#allocation28 + $0x70] sm:$0xff] }
 0x9a3   : > { %2982 = vrot.lane.b32.xlu0 %v2978_v55, %s4926_s3  ;;  %v3221_v55 = vld [vmem:[#allocation28 + $0x78] sm:$0xff]  ;;  %s5781_s3 = smov %s5780_s26 }
 0xa14   : > { %v2985_v56 = vpop.permute.xlu1 %2984 }
 0xa15   : > { %2990 = vst.msk [vmem:[#allocation3 + $0x8] sm:$0xff] %vm2988_vm8, %v2985_v56  ;;  %v2983_v57 = vpop.permute.xlu0 %2982  ;;  %v4043_v56 = vpack.c.bf16 %v3221_v55, %v3220_v54 }
 0xa16   : > { %2993 = vst.msk [vmem:[#allocation3 + $0x8] sm:$0xff] %vm2991_vm9, %v5528_v28  ;;  %v4013_v28 = vpack.c.bf16 %v3126_v63, %v3125_v62 }
 0xa17   : > { %2989 = vst.msk [vmem:[#allocation3] sm:$0xff] %vm2988_vm8, %v2983_v57  ;;  %v3131_v57 = vld [vmem:[#allocation27] sm:$0x1] }
 0xa18   : > { %2992 = vst.msk [vmem:[#allocation3] sm:$0xff] %vm2991_vm9, %v5530_v29  ;;  %v3127_v29 = vld [vmem:[#allocation25 + $0x20] sm:$0xff] }
 0xa19   : > { %v4016_v1 = vpack.c.bf16 %v3128_v0, %v3127_v29 }
 0xa1d   : > { %v2995_v59 = vld [vmem:[#allocation3 + $0x8] sm:$0xff] }
 0xa1f   : > { %v2994_v58 = vld [vmem:[#allocation3] sm:$0xff] }
 0xa20   : > { %3920 = vmatprep.mubr.msk.f32.mxu0 %vm794_vm0, %v2994_v58 }
 0xa21   : > { %3921 = vmatmul.mubr.msk.f32.vlgmr.msra.gmra.mrb[8].mxu0 %vm794_vm0, %v2995_v59 }
 0xa22   : > { %4011 = vmatpush3.bf16.msra.mxu0 %v4010_v60  ;;  %3939 = vmatprep.mubr.msk.f32.mxu0 %vm4928_vm10, %v4914_v14  ;;  %v3214_v14 = vld [vmem:[#allocation28 + $0x40] sm:$0xff] }
 0xa23   : > { %4012 = vmatprep.subr.bf16.mxu0 %v4927_v61  ;;  %v4034_v20 = vpack.c.bf16 %v3215_v19, %v3214_v14  ;;  %v3222_v60 = vld [vmem:[#allocation30] sm:$0x1] }
 0xa25   : > { %4035 = vmatpush3.bf16.msra.mxu1 %v4034_v20 }
 0xa26   : > { %4014 = vmatpush3.bf16.msra.mxu0 %v4013_v28  ;;  %4036 = vmatprep.subr.bf16.mxu1 %v4927_v61 }
 0xa27   : > { %4015 = vmatprep.subr.bf16.mxu0 %v4927_v61 }
 0xa29   : > { %4038 = vmatpush3.bf16.msra.mxu1 %v4037_v36 }
 0xa2a   : > { %4017 = vmatpush3.bf16.msra.mxu0 %v4016_v1  ;;  %4039 = vmatprep.subr.bf16.mxu1 %v4927_v61  ;;  %v3299_v1 = vlaneseq }
 0xa2b   : > { %4018 = vmatprep.subr.bf16.mxu0 %v4927_v61 }
 0xa2c   : > { %v3300_v2 = vshrl.u32 %v3299_v1, 7 }
 0xa2d   : > { %4041 = vmatpush3.bf16.msra.mxu1 %v4040_v24 }
 0xa2e   : > { %4020 = vmatpush3.bf16.msra.mxu0 %v4019_v4  ;;  %4042 = vmatprep.subr.bf16.mxu1 %v4927_v61  ;;  %v3301_v3 = vsub.s32 0, %v3300_v2 }
 0xa31   : > { %4044 = vmatpush3.bf16.msra.mxu1 %v4043_v56 }
 0xaf4   : > { %v3922_v26 = vpop.f32.mrb[8].mxu0 }
 0xaf5   : > { %v3089_v27 = vadd.f32 %v3922_v26, %v3657_v25  ;;  %v3083_v30 = vpop.f32.mrb[9].mxu0 }
 0xaf6   : > { %v3084_v32 = vadd.f32 %v3657_v25, %v3083_v30 }
 0xaf7   : > { %v3093_v37 = vmax.f32 %v3089_v27, 0.0 }
 0xaf8   : > { %v3092_v39 = vmax.f32 %v3084_v32, 0.0 }
 0xaf9   : > { %v3102_v40 = vmul.f32 %v3660_v31, %v3093_v37 }
 0xafa   : > { %v3101_v41 = vmul.f32 %v3660_v31, %v3092_v39 }
 0xafb   : > { %v3111_v42 = vadd.f32 %v3661_v38, %v3102_v40 }
 0xafc   : > { %v3110_v43 = vadd.f32 %v3661_v38, %v3101_v41 }
 0xafd   : > { %v3113_v44 = vsel %vm794_vm0, %v3111_v42, 0.0 }
 0xafe   : > { %v3112_v45 = vsel %vm794_vm0, %v3110_v43, 0.0 }
 0xaff   : > { %v3114_v46 = vadd.f32 %v3113_v44, %v3112_v45 }
 0xb01   : > { %v3115_v47 = vrot.slane %v3114_v46, 4 }
 0xb03   : > { %v3116_v48 = vadd.f32 %v3115_v47, %v3114_v46 }
 0xb05   : > { %v3117_v49 = vrot.slane %v3116_v48, 2 }
 0xb07   : > { %v3118_v50 = vadd.f32 %v3117_v49, %v3116_v48 }
 0xb09   : > { %v3119_v51 = vrot.slane %v3118_v50, 1 }
 0xb0b   : > { %v3120_v52 = vadd.f32 %v3119_v51, %v3118_v50 }
 0xb0d   : > { %v3122_v53 = vmul.f32 0.0625, %v3120_v52 }
 0xb0f   : > { %3940 = vmatmul.mubr.msk.f32.vlgmr.msra.gmra.mrb[10].mxu0 %vm794_vm0, %v3122_v53 }
 0xbe2   : > { %v3201_v58 = vpop.f32.mrb[10].mxu0 }
 0xbe3   : > { %v3202_v59 = vadd.f32 %v3201_v58, %v3131_v57  ;;  %v3941_v33 = vpop.f32.mrb[11].mxu0 }
 0xbe5   : > { %v3205_v34 = vmax.f32 %v3202_v59, 0.0 }
 0xbe7   : > { %3975 = vmatmul.mubr.f32.vlgmr.msra.gmra.mrb[10].mxu1 %v3205_v34 }
 0xcba   : > { %v3289_v61 = vpop.f32.mrb[10].mxu1 }
 0xcbb   : > { %v3290_v62 = vadd.f32 %v3289_v61, %v3222_v60  ;;  %v3976_v63 = vpop.f32.mrb[11].mxu1 }
 0xcbd   : > { %v3663_v28 = vmul.f32 -1.442695, %v3290_v62 }
 0xcbf   : > { %4312 = vpow2.f32 %v3663_v28 }
 0xcc9   : > { %v4313_v29 = vpop.eup %4312 }
 0xcca   : > { %v3296_v0 = vadd.f32 1.0, %v4313_v29 }
 0xccc   : > { %4314 = vrcp.f32 %v3296_v0 }
 0xcd6   : > { %v4315_v4 = vpop.eup %4314 }
 0xcd7   : > { %v3302_v5 = vrot.slane %v4315_v4, %v3301_v3 }
 0xcd9   : > { %v3303_v6 = vmul.f32 %v3302_v5, %v3110_v43  ;;  %v3304_v7 = vmul.f32 %v3302_v5, %v3111_v42 }
 0xcdb   : > { %v3305_v9 = vadd.f32 %v4316_v8, %v3303_v6  ;;  %v3306_v10 = vadd.f32 %v3304_v7, %v5522_v13 }
 0xcdd   : > { %3307 = vst.msk [vmem:[%s776_s30] sm:$0xff] %vm794_vm0, %v3305_v9  ;;  %3308 = vst.msk [vmem:[%s776_s30 + $0x8] sm:$0xff] %vm794_vm0, %v3306_v10 }
 0xcde   : > { %4808 = shalt.err (!%p4805_p13)
}
 0xcdf   : > { %s4809_s30 = scalar_lea.hbm %s5639_s24, 256  ;;  %s4813_s25 = scalar_lea.hbm %s5781_s3, 512 }
 0xce0   : > { %p4810_p1 = scmp.ne.s32.totalorder %s5639_s24, %s4809_s30  ;;  %p4814_p8 = scmp.lt.u32.totalorder %s5639_s24, %s5781_s3 }
 0xce1   : > { %p4815_p4 = scmp.lt.u32.totalorder %s4813_s25, %s4809_s30  ;;  %p4817_p11 = scmp.lt.u32.totalorder %s4809_s30, %s5639_s24 }
 0xce2   : > { %p4811_p3 = pnand %p4810_p1, %p5782_p0 }
 0xce3   : > { %p4816_p10 = por %p4815_p4, %p4814_p8 }
 0xce4   : > { %p4812_p2 = pneg %p4811_p3 }
 0xce5   : > { %p4818_p5 = por %p4817_p11, %p4816_p10 }
 0xce7   : > { %p4819_p7 = pnand %p4818_p5, %p4812_p2 }
 0xce9   : > { %4822 = shalt.err (!%p4819_p7)
}
 0xcea   : > { %s4930_s2 = smov 128   ;;  %s5783_s18 = scalar_lea.sflag [#allocation6], %s5475_s4 }
 0xceb   : > { %4153 = dma.vmem_to_hbm [thread:$0]  (%p5782_p0), %s5643_s22, 256, %s5639_s24, %s5783_s18, %s4930_s2, %s4930_s2, %s4921_s0  }
 0xcec PF: > { %s5784_s1 = sld [smem:[#allocation42_spill]]  ;;  %s5785_s21 = sld [smem:[#allocation45_spill]] }
 0xced   : > { %p5786_p6 = scmp.ne.s32.totalorder %s5755_s23, 0 }
 0xcf2   : > { %s3338_s26 = sand.u32 1, %s5784_s1   ;;  %p5787_p9 = scmp.ge.s32.totalorder %s5785_s21, 2 }
 0xcf3   : > { %s3339_s30 = scalar_lea.sflag [#allocation6], %s3338_s26 }
 0xcf4   : > { %p4209_p12 = pnand %p5787_p9, %p5786_p6 }
 0xcf6   : > { %4876 = dma.done.wait (!%p4209_p12), %s3339_s30, 256  }
 0xcf7   : > { %4878 = vsyncadd (!%p4209_p12), %s3339_s30, 4294967040  ;;  %s5788_s24 = sld [smem:[#allocation43_spill]]  ;;  %s5789_s25 = sld [smem:[#allocation44_spill]] }
 0xcf8   : > { %p38_p13 = scmp.ge.s32.totalorder %s5393_s27, 4   ;;  %s5790_s26 = smov %s5404_s19 }
 0xcfa   :  { %40 = sbr.rel (!%p38_p13) target bundleno = 21 (0x15), region = 217 }
 0xd01   :  { %3344 = vsyncpa [#allocation5], 1 }
 0xd02   :  { %3346 = vsyncpa [#allocation5 + $0x1], 1 }
 0xd03   :  { %3347 = vsyncpa [#allocation8], 1 }
 0xd04   :  { %3348 = vsyncpa [#allocation11], 1 }
 0xd05   :  { %3349 = vsyncpa [#allocation14], 1 }
 0xd06   :  { %3350 = vsyncpa [#allocation17], 1 }
 0xd07   :  { %3351 = vsyncpa [#allocation20], 1 }
 0xd08   :  { %3352 = vsyncpa [#allocation23], 1 }
 0xd09   :  { %3353 = vsyncpa [#allocation26], 1 }
 0xd0a   :  { %3354 = vsyncpa [#allocation29], 1 }
 0xd0b   :  { %3355 = vsyncpa [#allocation6], 1 }
 0xd0c   :  { %3357 = vsyncpa [#allocation6 + $0x1], 1 }

</bundles_post_ra>
